<compile_context>
chip_gen: v5e
topology: v5e:2x2
jax: 0.10.0
libtpu: 0.0.40
codegen_flags: <defaults>
</compile_context>

<pallas_src>
import functools

import jax
import jax.numpy as jnp
from jax import lax
from jax.experimental import pallas as pl
from jax.experimental.pallas import tpu as pltpu


def _round_up(x, m):
    return ((x + m - 1) // m) * m


def _erf(z):
    # Abramowitz & Stegun 7.1.26 rational approximation, |err| <= 1.5e-7.
    # Used only on the opt-in exact-GELU path (matches torch's erf GELU).
    p = 0.3275911
    a1, a2, a3, a4, a5 = (0.254829592, -0.284496736, 1.421413741,
                          -1.453152027, 1.061405429)
    za = jnp.abs(z)
    t = 1.0 / (1.0 + p * za)
    poly = ((((a5 * t + a4) * t + a3) * t + a2) * t + a1) * t
    y = 1.0 - poly * jnp.exp(-za * za)
    return jnp.where(z >= 0.0, y, -y)


_SQRT_2_OVER_PI = 0.7978845608028654


def _gelu(x, approximate):
    if approximate:
        # tanh-approx GELU: tanh lands on the EUP slot (free next to VPU/MXU).
        return 0.5 * x * (1.0 + jnp.tanh(
            _SQRT_2_OVER_PI * (x + 0.044715 * (x * x * x))))
    return 0.5 * x * (1.0 + _erf(x * 0.7071067811865476))


def _layer_norm(x, gamma, beta, eps):
    # Biased variance, like torch.nn.LayerNorm; rsqrt -> EUP slot.
    mean = jnp.mean(x, axis=-1, keepdims=True)
    xc = x - mean
    var = jnp.mean(xc * xc, axis=-1, keepdims=True)
    return (xc * lax.rsqrt(var + eps)) * gamma + beta


# ----------------------------------------------------------------------------
# Kernel A (default): weights fully resident in VMEM, 1-D grid over row tiles.
# ----------------------------------------------------------------------------
def _ffn_kernel_resident(x_ref, g_ref, be_ref, w1_ref, b1_ref, w2_ref, b2_ref,
                         o_ref, *, eps, matmul_dtype, approximate_gelu):
    x = x_ref[...].astype(jnp.float32)                       # (tm, D)
    xn = _layer_norm(x, g_ref[...], be_ref[...], eps)

    h = jnp.dot(xn.astype(matmul_dtype), w1_ref[...],
                preferred_element_type=jnp.float32) + b1_ref[...]
    h = _gelu(h, approximate_gelu)
    # Dropout(p=0.0) == identity -> skipped.

    y = jnp.dot(h.astype(matmul_dtype), w2_ref[...],
                preferred_element_type=jnp.float32) + b2_ref[...]
    o_ref[...] = y.astype(o_ref.dtype)


# ----------------------------------------------------------------------------
# Kernel B (fallback): hidden dim tiled (reduction grid axis), f32 accumulator.
# Used when the resident-weight footprint would not fit VMEM (e.g. v7x 64 MiB).
# ----------------------------------------------------------------------------
def _ffn_kernel_htiled(x_ref, g_ref, be_ref, w1_ref, b1_ref, w2_ref, b2_ref,
                       o_ref, xn_ref, acc_ref, *, eps, matmul_dtype,
                       approximate_gelu):
    j = pl.program_id(1)

    @pl.when(j == 0)
    def _():
        x = x_ref[...].astype(jnp.float32)
        xn = _layer_norm(x, g_ref[...], be_ref[...], eps)
        xn_ref[...] = xn.astype(xn_ref.dtype)
        acc_ref[...] = jnp.zeros_like(acc_ref)

    h = jnp.dot(xn_ref[...], w1_ref[...],
                preferred_element_type=jnp.float32) + b1_ref[...]
    h = _gelu(h, approximate_gelu)
    acc_ref[...] += jnp.dot(h.astype(matmul_dtype), w2_ref[...],
                            preferred_element_type=jnp.float32)

    @pl.when(j == pl.num_programs(1) - 1)
    def _():
        o_ref[...] = (acc_ref[...] + b2_ref[...]).astype(o_ref.dtype)


# ----------------------------------------------------------------------------
# Wrapper
# ----------------------------------------------------------------------------
def prepare_params(params, matmul_dtype=jnp.bfloat16):
    """Pre-cast matmul weights once (avoids a per-call HBM convert pass)."""
    p = dict(params)
    p["w1"] = params["w1"].astype(matmul_dtype)
    p["w2"] = params["w2"].astype(matmul_dtype)
    return p


def _choose_tm(M, block_rows):
    if block_rows is None:
        block_rows = 1024
    # >= 2 grid steps so both v7x TensorCores get work; otherwise as large as
    # possible (big row blocks approach the HBM roofline and amortize the
    # ~0.35us per-grid-step overhead).
    tm = min(block_rows, _round_up(pl.cdiv(M, 2), 8))
    tm = max(8, min(tm, _round_up(M, 8)))
    return tm


def _choose_th(H, hidden_block):
    if hidden_block is not None:
        if H % hidden_block != 0:
            raise ValueError("hidden_block must divide hidden_dim")
        return hidden_block
    for cand in (2048, 1024, 512, 256, 128):
        if H % cand == 0:
            return cand
    return H


def _vmem_limit(estimate_bytes):
    # Generous headroom over the computed footprint, clamped to sane values
    # (physical VMEM: 128 MiB v5e/v6e, 64 MiB v7x; default scoped 16/32 MiB).
    return int(min(96 << 20, max(32 << 20, 2 * estimate_bytes + (8 << 20))))


def feed_forward(x, params, *, eps=1e-5, block_rows=None,
                 matmul_dtype=jnp.bfloat16, approximate_gelu=True,
                 hidden_block=None, max_resident_weight_bytes=16 << 20):
    """Fused LayerNorm -> Linear -> GELU -> Linear.  x: (..., dim)."""
    orig_shape = x.shape
    D = orig_shape[-1]
    H = params["w1"].shape[1]
    io_dtype = x.dtype
    xf = x.reshape(-1, D)
    M = xf.shape[0]

    tm = _choose_tm(M, block_rows)
    grid_m = pl.cdiv(M, tm)

    gamma = params["gamma"].reshape(1, D).astype(jnp.float32)
    beta = params["beta"].reshape(1, D).astype(jnp.float32)
    w1 = params["w1"].astype(matmul_dtype)   # no-op if params were prepare_params()'d
    b1 = params["b1"].reshape(1, H).astype(jnp.float32)
    w2 = params["w2"].astype(matmul_dtype)
    b2 = params["b2"].reshape(1, D).astype(jnp.float32)

    io_bytes = jnp.dtype(io_dtype).itemsize
    mm_bytes = jnp.dtype(matmul_dtype).itemsize
    weight_bytes = 2 * D * H * mm_bytes
    use_htiled = (hidden_block is not None
                  or weight_bytes > max_resident_weight_bytes)

    resident = pl.Buffered(1)   # constant-index blocks: single VMEM copy

    if not use_htiled:
        vmem = (4 * tm * D * io_bytes          # x + out tiles, double-buffered
                + weight_bytes                 # resident weights (single copy)
                + tm * H * 4                   # hidden activation intermediate
                + (3 * D + H) * 4)             # gamma/beta/b1/b2
        kern = functools.partial(_ffn_kernel_resident, eps=eps,
                                 matmul_dtype=matmul_dtype,
                                 approximate_gelu=approximate_gelu)
        out = pl.pallas_call(
            kern,
            out_shape=jax.ShapeDtypeStruct((M, D), io_dtype),
            grid=(grid_m,),
            in_specs=[
                pl.BlockSpec((tm, D), lambda i: (i, 0)),          # x row tile
                pl.BlockSpec((1, D), lambda i: (0, 0), pipeline_mode=resident),
                pl.BlockSpec((1, D), lambda i: (0, 0), pipeline_mode=resident),
                pl.BlockSpec((D, H), lambda i: (0, 0), pipeline_mode=resident),
                pl.BlockSpec((1, H), lambda i: (0, 0), pipeline_mode=resident),
                pl.BlockSpec((H, D), lambda i: (0, 0), pipeline_mode=resident),
                pl.BlockSpec((1, D), lambda i: (0, 0), pipeline_mode=resident),
            ],
            out_specs=pl.BlockSpec((tm, D), lambda i: (i, 0)),
            compiler_params=pltpu.CompilerParams(
                dimension_semantics=("parallel",),
                vmem_limit_bytes=_vmem_limit(vmem)),
        )(xf, gamma, beta, w1, b1, w2, b2)
    else:
        th = _choose_th(H, hidden_block)
        grid_h = H // th
        vmem = (4 * tm * D * io_bytes
                + 4 * D * th * mm_bytes            # w1/w2 tiles, double-buffered
                + tm * D * mm_bytes + tm * D * 4   # xn + acc scratch
                + tm * th * 4                      # hidden tile intermediate
                + (3 * D + 2 * th) * 4)
        kern = functools.partial(_ffn_kernel_htiled, eps=eps,
                                 matmul_dtype=matmul_dtype,
                                 approximate_gelu=approximate_gelu)
        out = pl.pallas_call(
            kern,
            out_shape=jax.ShapeDtypeStruct((M, D), io_dtype),
            grid=(grid_m, grid_h),
            in_specs=[
                pl.BlockSpec((tm, D), lambda i, j: (i, 0)),       # x row tile
                pl.BlockSpec((1, D), lambda i, j: (0, 0), pipeline_mode=resident),
                pl.BlockSpec((1, D), lambda i, j: (0, 0), pipeline_mode=resident),
                pl.BlockSpec((D, th), lambda i, j: (0, j)),       # w1 col tile
                pl.BlockSpec((1, th), lambda i, j: (0, j)),       # b1 tile
                pl.BlockSpec((th, D), lambda i, j: (j, 0)),       # w2 row tile
                pl.BlockSpec((1, D), lambda i, j: (0, 0), pipeline_mode=resident),
            ],
            out_specs=pl.BlockSpec((tm, D), lambda i, j: (i, 0)),
            scratch_shapes=[pltpu.VMEM((tm, D), matmul_dtype),    # normed x
                            pltpu.VMEM((tm, D), jnp.float32)],    # f32 acc
            compiler_params=pltpu.CompilerParams(
                dimension_semantics=("parallel", "arbitrary"),
                vmem_limit_bytes=_vmem_limit(vmem)),
        )(xf, gamma, beta, w1, b1, w2, b2)

    return out.reshape(orig_shape)


# ----------------------------------------------------------------------------
# Pure-JAX reference (mirrors the PyTorch module exactly) + param init
# ----------------------------------------------------------------------------
def feed_forward_reference(x, params, eps=1e-5):
    mean = jnp.mean(x, axis=-1, keepdims=True)
    var = jnp.mean((x - mean) ** 2, axis=-1, keepdims=True)
    xn = (x - mean) / jnp.sqrt(var + eps)
    xn = xn * params["gamma"] + params["beta"]
    h = xn @ params["w1"] + params["b1"]
    h = 0.5 * h * (1.0 + jax.scipy.special.erf(h / jnp.sqrt(2.0)))
    return h @ params["w2"] + params["b2"]


def init_params(key, dim, hidden_dim):
    k1, k2, k3, k4 = jax.random.split(key, 4)
    lim1 = 1.0 / jnp.sqrt(jnp.float32(dim))
    lim2 = 1.0 / jnp.sqrt(jnp.float32(hidden_dim))
    return {
        "gamma": jnp.ones((dim,), jnp.float32),
        "beta": jnp.zeros((dim,), jnp.float32),
        # stored as (in, out) == torch_weight.T
        "w1": jax.random.uniform(k1, (dim, hidden_dim), jnp.float32, -lim1, lim1),
        "b1": jax.random.uniform(k2, (hidden_dim,), jnp.float32, -lim1, lim1),
        "w2": jax.random.uniform(k3, (hidden_dim, dim), jnp.float32, -lim2, lim2),
        "b2": jax.random.uniform(k4, (dim,), jnp.float32, -lim2, lim2),
    }


if __name__ == "__main__":
    key = jax.random.PRNGKey(0)
    kx, kp = jax.random.split(key)

    B, N, D, H = 2, 64, 128, 256          # small but lane-dense shapes
    x = jax.random.normal(kx, (B, N, D), jnp.float32)
    params = init_params(kp, D, H)

    ref = feed_forward_reference(x, params)

    # 1) Exact path (f32 MXU operands, exact-erf GELU): bit-faithful check.
    out_exact = feed_forward(x, params, matmul_dtype=jnp.float32,
                             approximate_gelu=False)
    jax.block_until_ready((out_exact, ref))
    assert out_exact.shape == (B, N, D)
    err = float(jnp.max(jnp.abs(out_exact - ref)))
    assert err < 1e-3, err

    # 2) Default perf path: bf16 MXU operands + tanh GELU, f32 accumulation.
    params_bf16 = prepare_params(params, jnp.bfloat16)
    out_fast = feed_forward(x, params_bf16)
    jax.block_until_ready(out_fast)
    assert out_fast.dtype == jnp.float32
    err = float(jnp.max(jnp.abs(out_fast - ref)))
    assert err < 5e-2, err

    # 3) bf16 activation I/O (halves the HBM row-stream bytes).
    out_bf16 = feed_forward(x.astype(jnp.bfloat16), params_bf16)
    jax.block_until_ready(out_bf16)
    assert out_bf16.dtype == jnp.bfloat16
    err = float(jnp.max(jnp.abs(out_bf16.astype(jnp.float32) - ref)))
    assert err < 1e-1, err

    # 4) Hidden-dim-tiled fallback (forced here; auto-selected when the
    #    resident weight footprint would exceed VMEM, e.g. real FFNs on v7x).
    out_ht = feed_forward(x, params_bf16, hidden_block=128)
    jax.block_until_ready(out_ht)
    err = float(jnp.max(jnp.abs(out_ht - ref)))
    assert err < 5e-2, err

    print("KERNEL_OK")
</pallas_src>

<mosaic_0001>
module attributes {stable_mosaic.version = 11 : i64} {
  func.func @_ffn_kernel_resident(%arg0: i32, %arg1: memref<64x128xf32, #tpu.memory_space<vmem>>, %arg2: memref<1x128xf32, #tpu.memory_space<vmem>>, %arg3: memref<1x128xf32, #tpu.memory_space<vmem>>, %arg4: memref<128x256xf32, #tpu.memory_space<vmem>>, %arg5: memref<1x256xf32, #tpu.memory_space<vmem>>, %arg6: memref<256x128xf32, #tpu.memory_space<vmem>>, %arg7: memref<1x128xf32, #tpu.memory_space<vmem>>, %arg8: memref<64x128xf32, #tpu.memory_space<vmem>>) attributes {dimension_semantics = [#tpu.dimension_semantics<parallel>], iteration_bounds = array<i64: 2>, scalar_prefetch = 0 : i64, scratch_operands = 0 : i64, tpu.core_type = #tpu.core_type<tc>, window_params = [{transform_indices = @transform_0, window_bounds = array<i64: 64, 128>}, {pipeline_mode = #tpu.pipeline_mode<synchronous>, transform_indices = @transform_1, window_bounds = array<i64: 1, 128>}, {pipeline_mode = #tpu.pipeline_mode<synchronous>, transform_indices = @transform_2, window_bounds = array<i64: 1, 128>}, {pipeline_mode = #tpu.pipeline_mode<synchronous>, transform_indices = @transform_3, window_bounds = array<i64: 128, 256>}, {pipeline_mode = #tpu.pipeline_mode<synchronous>, transform_indices = @transform_4, window_bounds = array<i64: 1, 256>}, {pipeline_mode = #tpu.pipeline_mode<synchronous>, transform_indices = @transform_5, window_bounds = array<i64: 256, 128>}, {pipeline_mode = #tpu.pipeline_mode<synchronous>, transform_indices = @transform_6, window_bounds = array<i64: 1, 128>}, {transform_indices = @transform_7, window_bounds = array<i64: 64, 128>}]} {
    %c0 = arith.constant 0 : index
    %c0_0 = arith.constant 0 : index
    %0 = vector.load %arg1[%c0, %c0_0] : memref<64x128xf32, #tpu.memory_space<vmem>>, vector<64x128xf32>
    %c0_1 = arith.constant 0 : index
    %c0_2 = arith.constant 0 : index
    %1 = vector.load %arg2[%c0_1, %c0_2] : memref<1x128xf32, #tpu.memory_space<vmem>>, vector<1x128xf32>
    %c0_3 = arith.constant 0 : index
    %c0_4 = arith.constant 0 : index
    %2 = vector.load %arg3[%c0_3, %c0_4] : memref<1x128xf32, #tpu.memory_space<vmem>>, vector<1x128xf32>
    %cst = arith.constant dense<0.000000e+00> : vector<64xf32>
    %3 = vector.multi_reduction <add>, %0, %cst [1] : vector<64x128xf32> to vector<64xf32>
    %4 = vector.shape_cast %3 : vector<64xf32> to vector<64x1xf32>
    %cst_5 = arith.constant 1.280000e+02 : f32
    %5 = vector.broadcast %cst_5 : f32 to vector<64x1xf32>
    %6 = arith.divf %4, %5 : vector<64x1xf32>
    %7 = vector.broadcast %6 : vector<64x1xf32> to vector<64x128xf32>
    %8 = arith.subf %0, %7 : vector<64x128xf32>
    %9 = arith.mulf %8, %8 : vector<64x128xf32>
    %cst_6 = arith.constant dense<0.000000e+00> : vector<64xf32>
    %10 = vector.multi_reduction <add>, %9, %cst_6 [1] : vector<64x128xf32> to vector<64xf32>
    %11 = vector.shape_cast %10 : vector<64xf32> to vector<64x1xf32>
    %cst_7 = arith.constant 1.280000e+02 : f32
    %12 = vector.broadcast %cst_7 : f32 to vector<64x1xf32>
    %13 = arith.divf %11, %12 : vector<64x1xf32>
    %cst_8 = arith.constant 9.99999974E-6 : f32
    %14 = vector.broadcast %cst_8 : f32 to vector<64x1xf32>
    %15 = arith.addf %13, %14 : vector<64x1xf32>
    %16 = math.rsqrt %15 : vector<64x1xf32>
    %17 = vector.broadcast %16 : vector<64x1xf32> to vector<64x128xf32>
    %18 = arith.mulf %8, %17 : vector<64x128xf32>
    %19 = vector.broadcast %1 : vector<1x128xf32> to vector<64x128xf32>
    %20 = arith.mulf %18, %19 : vector<64x128xf32>
    %21 = vector.broadcast %2 : vector<1x128xf32> to vector<64x128xf32>
    %22 = arith.addf %20, %21 : vector<64x128xf32>
    %c0_9 = arith.constant 0 : index
    %c0_10 = arith.constant 0 : index
    %23 = vector.load %arg4[%c0_9, %c0_10] : memref<128x256xf32, #tpu.memory_space<vmem>>, vector<128x256xf32>
    %cst_11 = arith.constant dense<0.000000e+00> : vector<64x256xf32>
    %24 = tpu.matmul %22, %23, %cst_11 {dimension_numbers = #tpu.dot_dimension_numbers<[1], [0], [0], [1], [0, 0, 1, 1], [], []>} : vector<64x128xf32>, vector<128x256xf32>, vector<64x256xf32> -> vector<64x256xf32>
    %c0_12 = arith.constant 0 : index
    %c0_13 = arith.constant 0 : index
    %25 = vector.load %arg5[%c0_12, %c0_13] : memref<1x256xf32, #tpu.memory_space<vmem>>, vector<1x256xf32>
    %26 = vector.broadcast %25 : vector<1x256xf32> to vector<64x256xf32>
    %27 = arith.addf %24, %26 : vector<64x256xf32>
    %cst_14 = arith.constant 5.000000e-01 : f32
    %28 = vector.broadcast %cst_14 : f32 to vector<64x256xf32>
    %29 = arith.mulf %28, %27 : vector<64x256xf32>
    %cst_15 = arith.constant 0.707106769 : f32
    %30 = vector.broadcast %cst_15 : f32 to vector<64x256xf32>
    %31 = arith.mulf %27, %30 : vector<64x256xf32>
    %32 = math.absf %31 : vector<64x256xf32>
    %cst_16 = arith.constant 0.327591091 : f32
    %33 = vector.broadcast %cst_16 : f32 to vector<64x256xf32>
    %34 = arith.mulf %33, %32 : vector<64x256xf32>
    %cst_17 = arith.constant 1.000000e+00 : f32
    %35 = vector.broadcast %cst_17 : f32 to vector<64x256xf32>
    %36 = arith.addf %35, %34 : vector<64x256xf32>
    %cst_18 = arith.constant 1.000000e+00 : f32
    %37 = vector.broadcast %cst_18 : f32 to vector<64x256xf32>
    %38 = arith.divf %37, %36 : vector<64x256xf32>
    %cst_19 = arith.constant 1.06140542 : f32
    %39 = vector.broadcast %cst_19 : f32 to vector<64x256xf32>
    %40 = arith.mulf %39, %38 : vector<64x256xf32>
    %cst_20 = arith.constant -1.45315206 : f32
    %41 = vector.broadcast %cst_20 : f32 to vector<64x256xf32>
    %42 = arith.addf %40, %41 : vector<64x256xf32>
    %43 = arith.mulf %42, %38 : vector<64x256xf32>
    %cst_21 = arith.constant 1.42141378 : f32
    %44 = vector.broadcast %cst_21 : f32 to vector<64x256xf32>
    %45 = arith.addf %43, %44 : vector<64x256xf32>
    %46 = arith.mulf %45, %38 : vector<64x256xf32>
    %cst_22 = arith.constant -0.284496725 : f32
    %47 = vector.broadcast %cst_22 : f32 to vector<64x256xf32>
    %48 = arith.addf %46, %47 : vector<64x256xf32>
    %49 = arith.mulf %48, %38 : vector<64x256xf32>
    %cst_23 = arith.constant 0.254829586 : f32
    %50 = vector.broadcast %cst_23 : f32 to vector<64x256xf32>
    %51 = arith.addf %49, %50 : vector<64x256xf32>
    %52 = arith.mulf %51, %38 : vector<64x256xf32>
    %cst_24 = arith.constant 0.000000e+00 : f32
    %53 = vector.broadcast %cst_24 : f32 to vector<64x256xf32>
    %54 = arith.subf %53, %32 : vector<64x256xf32>
    %55 = arith.mulf %54, %32 : vector<64x256xf32>
    %56 = math.exp %55 : vector<64x256xf32>
    %57 = arith.mulf %52, %56 : vector<64x256xf32>
    %cst_25 = arith.constant 1.000000e+00 : f32
    %58 = vector.broadcast %cst_25 : f32 to vector<64x256xf32>
    %59 = arith.subf %58, %57 : vector<64x256xf32>
    %cst_26 = arith.constant 0.000000e+00 : f32
    %60 = vector.broadcast %cst_26 : f32 to vector<64x256xf32>
    %61 = arith.cmpf oge, %31, %60 : vector<64x256xf32>
    %cst_27 = arith.constant 0.000000e+00 : f32
    %62 = vector.broadcast %cst_27 : f32 to vector<64x256xf32>
    %63 = arith.subf %62, %59 : vector<64x256xf32>
    %64 = arith.select %61, %59, %63 : vector<64x256xi1>, vector<64x256xf32>
    %cst_28 = arith.constant 1.000000e+00 : f32
    %65 = vector.broadcast %cst_28 : f32 to vector<64x256xf32>
    %66 = arith.addf %65, %64 : vector<64x256xf32>
    %67 = arith.mulf %29, %66 : vector<64x256xf32>
    %c0_29 = arith.constant 0 : index
    %c0_30 = arith.constant 0 : index
    %68 = vector.load %arg6[%c0_29, %c0_30] : memref<256x128xf32, #tpu.memory_space<vmem>>, vector<256x128xf32>
    %cst_31 = arith.constant dense<0.000000e+00> : vector<64x128xf32>
    %69 = tpu.matmul %67, %68, %cst_31 {dimension_numbers = #tpu.dot_dimension_numbers<[1], [0], [0], [1], [0, 0, 1, 1], [], []>} : vector<64x256xf32>, vector<256x128xf32>, vector<64x128xf32> -> vector<64x128xf32>
    %c0_32 = arith.constant 0 : index
    %c0_33 = arith.constant 0 : index
    %70 = vector.load %arg7[%c0_32, %c0_33] : memref<1x128xf32, #tpu.memory_space<vmem>>, vector<1x128xf32>
    %71 = vector.broadcast %70 : vector<1x128xf32> to vector<64x128xf32>
    %72 = arith.addf %69, %71 : vector<64x128xf32>
    %c0_34 = arith.constant 0 : index
    %c0_35 = arith.constant 0 : index
    %73 = vector.load %arg8[%c0_34, %c0_35] : memref<64x128xf32, #tpu.memory_space<vmem>>, vector<64x128xf32>
    tpu.vector_store %arg8[%c0_34, %c0_35], %72 {strides = array<i32>} : memref<64x128xf32, #tpu.memory_space<vmem>>, vector<64x128xf32>,
    return
  }
  func.func @transform_0(%arg0: i32) -> (i32, i32) {
    %c0_i32 = arith.constant 0 : i32
    %c0_i32_0 = arith.constant 0 : i32
    return %arg0, %c0_i32 : i32, i32
  }
  func.func @transform_1(%arg0: i32) -> (i32, i32) {
    %c0_i32 = arith.constant 0 : i32
    %c0_i32_0 = arith.constant 0 : i32
    %c0_i32_1 = arith.constant 0 : i32
    return %c0_i32, %c0_i32_0 : i32, i32
  }
  func.func @transform_2(%arg0: i32) -> (i32, i32) {
    %c0_i32 = arith.constant 0 : i32
    %c0_i32_0 = arith.constant 0 : i32
    %c0_i32_1 = arith.constant 0 : i32
    return %c0_i32, %c0_i32_0 : i32, i32
  }
  func.func @transform_3(%arg0: i32) -> (i32, i32) {
    %c0_i32 = arith.constant 0 : i32
    %c0_i32_0 = arith.constant 0 : i32
    %c0_i32_1 = arith.constant 0 : i32
    return %c0_i32, %c0_i32_0 : i32, i32
  }
  func.func @transform_4(%arg0: i32) -> (i32, i32) {
    %c0_i32 = arith.constant 0 : i32
    %c0_i32_0 = arith.constant 0 : i32
    %c0_i32_1 = arith.constant 0 : i32
    return %c0_i32, %c0_i32_0 : i32, i32
  }
  func.func @transform_5(%arg0: i32) -> (i32, i32) {
    %c0_i32 = arith.constant 0 : i32
    %c0_i32_0 = arith.constant 0 : i32
    %c0_i32_1 = arith.constant 0 : i32
    return %c0_i32, %c0_i32_0 : i32, i32
  }
  func.func @transform_6(%arg0: i32) -> (i32, i32) {
    %c0_i32 = arith.constant 0 : i32
    %c0_i32_0 = arith.constant 0 : i32
    %c0_i32_1 = arith.constant 0 : i32
    return %c0_i32, %c0_i32_0 : i32, i32
  }
  func.func @transform_7(%arg0: i32) -> (i32, i32) {
    %c0_i32 = arith.constant 0 : i32
    %c0_i32_0 = arith.constant 0 : i32
    return %arg0, %c0_i32 : i32, i32
  }
}

</mosaic_0001>

<bundles_post_ra>
// kernel: tpu_custom_call.1
= control target key start
LH: loop header
LB: loop body
LE: loop exit
PB: predicated region body
PF: predicated region fallthrough
CT: control target
= control target key end

     0   :  { %s3086_s0 = inlined_call_operand.hbm [shape: f32[128,128], index: 0, kind: input, shape index: {}]   ;;  %s3087_s1 = inlined_call_operand.hbm [shape: f32[1,128], index: 1, kind: input, shape index: {}]   ;;  %s3088_s2 = inlined_call_operand.vmem [shape: f32[1,128], index: 2, kind: input, shape index: {}]   ;;  %s3089_s3 = inlined_call_operand.hbm [shape: f32[128,256], index: 3, kind: input, shape index: {}]   ;;  %s3090_s4 = inlined_call_operand.vmem [shape: f32[1,256], index: 4, kind: input, shape index: {}]   ;;  %s3091_s5 = inlined_call_operand.hbm [shape: f32[256,128], index: 5, kind: input, shape index: {}]   ;;  %s3092_s6 = inlined_call_operand.vmem [shape: f32[1,128], index: 6, kind: input, shape index: {}]   ;;  %s3093_s7 = inlined_call_operand.hbm [shape: f32[128,128], index: 7, kind: output, shape index: {}]  }
   0x1   :  { %3120 = sst [smem:[#allocation42_spill]] %s3087_s1 }
   0x2   :  { %12 = vsyncpa [#allocation3], 0 }
   0x3   :  { %14 = vsyncpa [#allocation3 + $0x1], 0 }
   0x4   :  { %15 = vsyncpa [#allocation6], 0 }
   0x5   :  { %16 = vsyncpa [#allocation9], 0 }
   0x6   :  { %17 = vsyncpa [#allocation4], 0 }
   0x7   :  { %19 = vsyncpa [#allocation4 + $0x1], 0  ;;  %s1989_s24 = smov 0   ;;  %s1991_s25 = smov 0  }
   0x8   :  { %s1993_s26 = smov 0   ;;  %s1995_s27 = smov 0  }
   0x9 LB: > { %s2010_s28 = sadd.s32 4294967295, %s1937_s27   ;;  %s1552_s29 = sadd.s32 4294967294, %s1937_s27   ;;  %s1937_s27 = sphi %s1995_s27, %s3239_s27   ;;  %s1933_s26 = sphi %s1993_s26, %s3238_s26   ;;  %s1929_s25 = sphi %s1991_s25, %s3237_s25   ;;  %s1925_s24 = sphi %s1989_s24, %s3236_s24  }
   0xa   : > { %p45_p0 = scmp.ne.s32.totalorder %s1929_s25, %s1925_s24  ;;  %p46_p1 = scmp.eq.s32.totalorder %s2010_s28, 0 }
   0xb   : > { %p195_p2 = scmp.eq.s32.totalorder %s2010_s28, 1  ;;  %p201_p3 = scmp.eq.s32.totalorder %s1552_s29, 1 }
   0xc   : > { %p2019_p4 = por %p46_p1, %p45_p0  ;;  %p1553_p5 = scmp.ge.s32.totalorder %s1937_s27, 1 }
   0xd   : > { %p2024_p6 = por %p201_p3, %p45_p0  ;;  %p208_p7 = scmp.lt.s32.totalorder %s1937_s27, 3 }
   0xe   : > { %s3123_s1 = sld [smem:[#allocation42_spill]]  ;;  %s1939_s13 = smov [#allocation5]  }
   0xf   : > { %p2032_p8 = pnand %p1553_p5, %p208_p7  ;;  %s222_s14 = sshll.u32 %s1939_s13, 4  ;;  %s223_s14 = int_to_ptr.vmem [resolvable:$true] %s222_s14 }
  0x10   : > { %s234_s17 = sshll.u32 %s3089_s3, 4  ;;  %s1940_s19 = smov [#allocation7]   ;;  %s235_s17 = int_to_ptr.hbm [resolvable:$true] %s234_s17 }
  0x11   : > { %p1590_p10 = pneg %p2032_p8  ;;  %s236_s20 = sshll.u32 %s1940_s19, 4  ;;  %s237_s20 = int_to_ptr.vmem [resolvable:$true] %s236_s20 }
  0x12   : > { %s1941_s21 = smov 256   ;;  %s1942_s22 = smov 16  }
  0x13   : > { %p2044_p11 = pnand %p1590_p10, %p46_p1  ;;  %s251_s9 = sshll.u32 %s3091_s5, 4  ;;  %s252_s9 = int_to_ptr.hbm [resolvable:$true] %s251_s9 }
  0x14   : > { %s220_s11 = sshll.u32 %s3123_s1, 4  ;;  %s1943_s10 = smov [#allocation8]   ;;  %s221_s11 = int_to_ptr.hbm [resolvable:$true] %s220_s11 }
  0x15   : > { %1593 = dma.hbm_to_vmem [thread:$0]  (!%p2044_p11), %s221_s11, 16, %s223_s14, [#allocation6]  }
  0x16   : > { %1596 = dma.hbm_to_vmem [thread:$0]  (!%p2044_p11), %s235_s17, 4096, %s237_s20, [#allocation6], %s1941_s21, %s1941_s21, %s1942_s22  }
  0x17   : > { %s253_s11 = sshll.u32 %s1943_s10, 4  ;;  %s3094_s13 = smov 128   ;;  %s254_s11 = int_to_ptr.vmem [resolvable:$true] %s253_s11 }
  0x18   : > { %s3095_s14 = smov 8   ;;  %s2061_s15 = sadd.s32 1, %s1937_s27  }
  0x19   : > { %1599 = dma.hbm_to_vmem [thread:$0]  (!%p2044_p11), %s252_s9, 4096, %s254_s11, [#allocation9], %s3094_s13, %s3094_s13, %s3095_s14  }
  0x1a   : > { %s29_s16 = ssub.s32 %s1937_s27, %s2061_s15  ;;  %s32_s17 = sadd.s32 1, %s1933_s26 }
  0x1b   : > { %p30_p12 = scmp.eq.s32.totalorder %s29_s16, 0  ;;  %p39_p13 = scmp.ne.s32.totalorder %s1933_s26, %s1929_s25 }
  0x1c   : > { %p40_p0 = scmp.eq.s32.totalorder %s1937_s27, 0  ;;  %p1611_p5 = scmp.lt.s32.totalorder %s1937_s27, 2 }
  0x1d   : > { %s2070_s19 = scalar_select %p30_p12, %s1933_s26, %s32_s17  }
  0x1e   : > { %p2074_p3 = por %p195_p2, %p39_p13  ;;  %s270_s18 = sand.u32 1, %s1933_s26  }
  0x1f   : > { %s1572_s21 = sshll.u32 %s1937_s27, 6  ;;  %p41_p7 = por %p40_p0, %p39_p13 }
  0x20   : > { %s1558_s22 = sshll.u32 %s270_s18, 6  ;;  %s279_s9 = scalar_lea.hbm %s3086_s0, %s1572_s21 }
  0x21   : > { %s280_s10 = sshll.u32 %s279_s9, 4  ;;  %s274_s11 = scalar_lea.vmem [#allocation2], %s1558_s22  ;;  %s281_s10 = int_to_ptr.hbm [resolvable:$true] %s280_s10 }
  0x22   : > { %s282_s16 = sshll.u32 %s274_s11, 4  ;;  %p2084_p10 = pnand %p1611_p5, %p41_p7  ;;  %s283_s16 = int_to_ptr.vmem [resolvable:$true] %s282_s16 }
  0x23   : > { %s271_s13 = scalar_lea.sflag [#allocation3], %s270_s18  ;;  %s1833_s14 = sshra.s32 %s281_s10, 4  ;;  %s1834_s14 = int_to_ptr.hbm [resolvable:$true] %s1833_s14 }
  0x24   : > { %s1835_s1 = scalar_lea.hbm %s1834_s14, 64  ;;  %p1837_p11 = pneg %p2084_p10 }
  0x25   : > { %p1836_p2 = scmp.ne.s32.totalorder %s1834_s14, %s1835_s1  ;;  %s1840_s22 = scalar_lea.hbm %s3086_s0, 128 }
  0x26   : > { %p1841_p0 = scmp.lt.s32.totalorder %s1834_s14, %s3086_s0  ;;  %p1842_p5 = scmp.lt.s32.totalorder %s1840_s22, %s1835_s1 }
  0x27   : > { %p1838_p12 = pnand %p1837_p11, %p1836_p2 }
  0x28   : > { %p1843_p7 = por %p1842_p5, %p1841_p0 }
  0x29   : > { %p1839_p13 = pneg %p1838_p12 }
  0x2b   : > { %p1844_p9 = pnand %p1843_p7, %p1839_p13 }
  0x2d   : > { %1847 = shalt.err (!%p1844_p9)
}
  0x2e   : > { %s3128_s18 = smov 8   ;;  %s3129_s11 = smov 128  }
  0x2f   : > { %1603 = dma.hbm_to_vmem [thread:$0]  (!%p2084_p10), %s281_s10, 1024, %s283_s16, %s271_s13, %s3129_s11, %s3129_s11, %s3128_s18  }
  0x30   : > { %294 = sbr.rel (%p2032_p8) target bundleno = 782 (0x30e), region = 48 }
  0x35   : > { %s2104_s21 = sand.u32 1, %s1929_s25  }
  0x36   : > { %s1562_s1 = sshll.u32 %s2104_s21, 6  ;;  %s297_s14 = scalar_lea.sflag [#allocation3], %s2104_s21 }
  0x37   : > { %s2110_s23 = scalar_lea.vmem [#allocation2], %s1562_s1 }
  0x38   : > { %1908 = dma.done.wait (%p2019_p4), %s297_s14, 1024  }
  0x39   : > { %1910 = vsyncadd (%p2019_p4), %s297_s14, 4294966272 }
  0x3a   : > { %1912 = dma.done.wait (%p46_p1), [#allocation6], 4112  }
  0x3b   : > { %1914 = vsyncadd (%p46_p1), [#allocation6], 4294963184 }
  0x3c   : > { %1916 = dma.done.wait (%p46_p1), [#allocation9], 4096  }
  0x3d   : > { %1918 = vsyncadd (%p46_p1), [#allocation9], 4294963200  ;;  %v353_v0 = vld [vmem:[%s2110_s23 + $0x20] sm:$0xff]  ;;  %v351_v1 = vld [vmem:[%s2110_s23 + $0x10] sm:$0xff]  ;;  %v1946_v7 = vmov 128.0   ;;  %s3042_s22 = scalar_lea.vmem [#allocation10], %s1562_s1 }
  0x3e   : > { %v349_v2 = vld [vmem:[%s2110_s23] sm:$0xff]  ;;  %367 = vadd.xlane.f32.xlu2 %v353_v0  ;;  %363 = vadd.xlane.f32.xlu1 %v351_v1  ;;  %v354_v3 = vld [vmem:[%s2110_s23 + $0x28] sm:$0xff]  ;;  %v352_v4 = vld [vmem:[%s2110_s23 + $0x18] sm:$0xff]  ;;  %1661 = vrcp.f32 %v1946_v7  ;;  %s1573_s29 = sshll.u32 %s2010_s28, 6  ;;  %s1447_s1 = sshll.u32 %s3042_s22, 4  ;;  %s1448_s1 = int_to_ptr.vmem [resolvable:$true] %s1447_s1 }
  0x3f   : > { %359 = vadd.xlane.f32.xlu0 %v349_v2  ;;  %v350_v5 = vld [vmem:[%s2110_s23 + $0x8] sm:$0xff]  ;;  %v355_v6 = vld [vmem:[%s2110_s23 + $0x30] sm:$0xff]  ;;  %v579_v17 = vld [vmem:[#allocation7 + $0xf8] sm:$0xff]  ;;  %s1446_s11 = scalar_lea.hbm %s3093_s7, %s1573_s29  ;;  %s1883_s10 = scalar_lea.hbm %s3093_s7, 128 }
  0x40   : > { %v578_v16 = vld [vmem:[#allocation7 + $0xf0] sm:$0xff]  ;;  %v576_v18 = vld [vmem:[#allocation7 + $0xe0] sm:$0xff]  ;;  %627 = vmatpush.msra.mxu1 %v579_v17  ;;  %v577_v21 = vld [vmem:[#allocation7 + $0xe8] sm:$0xff]  ;;  %s1449_s14 = sshll.u32 %s1446_s11, 4  ;;  %s1450_s14 = int_to_ptr.hbm [resolvable:$true] %s1449_s14 }
  0x41   : > { %586 = vmatpush.msra.mxu0 %v578_v16  ;;  %v2154_v37 = vld [vmem:[%s2110_s23 + $0x38] sm:$0xff]  ;;  %v572_v49 = vld [vmem:[#allocation7 + $0xc0] sm:$0xff]  ;;  %v573_v50 = vld [vmem:[#allocation7 + $0xc8] sm:$0xff]  ;;  %s1435_s23 = scalar_lea.sflag [#allocation4], %s2104_s21  ;;  %s1877_s30 = sshra.s32 %s1450_s14, 4  ;;  %s1878_s30 = int_to_ptr.hbm [resolvable:$true] %s1877_s30 }
  0x42   : > { %628 = vmatpush.msra.mxu1 %v577_v21  ;;  %v574_v47 = vld [vmem:[#allocation7 + $0xd0] sm:$0xff]  ;;  %v575_v48 = vld [vmem:[#allocation7 + $0xd8] sm:$0xff]  ;;  %v568_v53 = vld [vmem:[#allocation7 + $0xa0] sm:$0xff]  ;;  %s1879_s12 = scalar_lea.hbm %s1878_s30, 64  ;;  %p1884_p9 = scmp.lt.s32.totalorder %s1878_s30, %s3093_s7 }
  0x43   : > { %587 = vmatpush.msra.mxu0 %v576_v18  ;;  %v570_v51 = vld [vmem:[#allocation7 + $0xb0] sm:$0xff]  ;;  %v571_v52 = vld [vmem:[#allocation7 + $0xb8] sm:$0xff]  ;;  %v569_v54 = vld [vmem:[#allocation7 + $0xa8] sm:$0xff]  ;;  %p1880_p1 = scmp.ne.s32.totalorder %s1878_s30, %s1879_s12  ;;  %p1885_p10 = scmp.lt.s32.totalorder %s1883_s10, %s1879_s12 }
  0x44   : > { %v1662_v8 = vpop.eup %1661  ;;  %629 = vmatpush.msra.mxu1 %v575_v48  ;;  %v566_v55 = vld [vmem:[#allocation7 + $0x90] sm:$0xff]  ;;  %v567_v56 = vld [vmem:[#allocation7 + $0x98] sm:$0xff]  ;;  %v564_v57 = vld [vmem:[#allocation7 + $0x80] sm:$0xff] }
  0x45   : > { %v376_v9 = vmul.f32 128.0, %v1662_v8  ;;  %vm380_vm0 = vweird.f32 %v1662_v8  ;;  %588 = vmatpush.msra.mxu0 %v574_v47  ;;  %v565_v58 = vld [vmem:[#allocation7 + $0x88] sm:$0xff]  ;;  %v562_v59 = vld [vmem:[#allocation7 + $0x70] sm:$0xff]  ;;  %v563_v60 = vld [vmem:[#allocation7 + $0x78] sm:$0xff]  ;;  %p1881_p4 = pnand %p1880_p1, %p2074_p3  ;;  %p1886_p2 = por %p1885_p10, %p1884_p9 }
  0x46   : > { %369 = vadd.xlane.f32.xlu2 %v354_v3  ;;  %365 = vadd.xlane.f32.xlu1 %v352_v4  ;;  %v560_v61 = vld [vmem:[#allocation7 + $0x60] sm:$0xff]  ;;  %v561_v62 = vld [vmem:[#allocation7 + $0x68] sm:$0xff]  ;;  %v558_v63 = vld [vmem:[#allocation7 + $0x50] sm:$0xff] }
  0x47   : > { %361 = vadd.xlane.f32.xlu0 %v350_v5  ;;  %v377_v10 = vsub.f32 1.0, %v376_v9  ;;  %589 = vmatpush.msra.mxu0 %v572_v49  ;;  %v550_v7 = vld [vmem:[#allocation7 + $0x10] sm:$0xff]  ;;  %v548_v9 = vld [vmem:[#allocation7] sm:$0xff]  ;;  %p1882_p8 = pneg %p1881_p4 }
  0x48   : > { %630 = vmatpush.msra.mxu1 %v573_v50 }
  0x49   : > { %v378_v11 = vmul.f32 %v1662_v8, %v377_v10  ;;  %590 = vmatpush.msra.mxu0 %v570_v51  ;;  %v549_v10 = vld [vmem:[#allocation7 + $0x8] sm:$0xff]  ;;  %p1887_p11 = pnand %p1886_p2, %p1882_p8 }
  0x4a   : > { %631 = vmatpush.msra.mxu1 %v571_v52  ;;  %v2190_v52 = vld [vmem:[#allocation5] ss:$0 sm:$0xff] }
  0x4b   : > { %v379_v12 = vadd.f32 %v1662_v8, %v378_v11  ;;  %591 = vmatpush.msra.mxu0 %v568_v53 }
  0x4c   : > { %632 = vmatpush.msra.mxu1 %v569_v54 }
  0x4d   : > { %v2131_v13 = vsel %vm380_vm0, %v1662_v8, %v379_v12  ;;  %592 = vmatpush.msra.mxu0 %v566_v55  ;;  %v551_v8 = vld [vmem:[#allocation7 + $0x18] sm:$0xff] }
  0x4e   : > { %371 = vadd.xlane.f32.xlu1 %v355_v6  ;;  %633 = vmatpush.msra.mxu1 %v567_v56 }
  0x4f   : > { %593 = vmatpush.msra.mxu0 %v564_v57  ;;  %v2199_v57 = vld [vmem:[%s3088_s2] ss:$0 sm:$0xff] }
  0x50   : > { %634 = vmatpush.msra.mxu1 %v565_v58 }
  0x51   : > { %594 = vmatpush.msra.mxu0 %v562_v59 }
  0x52   : > { %635 = vmatpush.msra.mxu1 %v563_v60 }
  0x53   : > { %595 = vmatpush.msra.mxu0 %v560_v61 }
  0x54   : > { %636 = vmatpush.msra.mxu1 %v561_v62 }
  0x55   : > { %596 = vmatpush.msra.mxu0 %v558_v63 }
  0xb1   : > { %v368_v14 = vpop.xlane.xlu2 %367  ;;  %v364_v15 = vpop.xlane.xlu1 %363 }
  0xb2   : > { %v384_v19 = vmul.f32 %v2131_v13, %v364_v15  ;;  %v360_v20 = vpop.xlane.xlu0 %359  ;;  %v386_v33 = vmul.f32 %v2131_v13, %v368_v14 }
  0xb3   : > { %v382_v22 = vmul.f32 %v2131_v13, %v360_v20 }
  0xb4   : > { %v2135_v23 = vsub.f32 %v351_v1, %v384_v19  ;;  %v2158_v39 = vsub.f32 %v353_v0, %v386_v33  ;;  %v559_v0 = vld [vmem:[#allocation7 + $0x58] sm:$0xff]  ;;  %v556_v1 = vld [vmem:[#allocation7 + $0x40] sm:$0xff] }
  0xb5   : > { %v2137_v24 = vsub.f32 %v349_v2, %v382_v22  ;;  %637 = vmatpush.msra.mxu1 %v559_v0  ;;  %v557_v2 = vld [vmem:[#allocation7 + $0x48] sm:$0xff]  ;;  %597 = vmatpush.msra.mxu0 %v556_v1 }
  0xb6   : > { %v400_v25 = vmul.f32 %v2135_v23, %v2135_v23  ;;  %v402_v42 = vmul.f32 %v2158_v39, %v2158_v39 }
  0xb7   : > { %v398_v26 = vmul.f32 %v2137_v24, %v2137_v24  ;;  %638 = vmatpush.msra.mxu1 %v557_v2 }
  0xb8   : > { %410 = vadd.xlane.f32.xlu1 %v400_v25 }
  0xb9   : > { %406 = vadd.xlane.f32.xlu0 %v398_v26  ;;  %v370_v27 = vpop.xlane.xlu2 %369  ;;  %v366_v28 = vpop.xlane.xlu1 %365 }
  0xba   : > { %v387_v29 = vmul.f32 %v2131_v13, %v370_v27  ;;  %v362_v30 = vpop.xlane.xlu0 %361  ;;  %v385_v35 = vmul.f32 %v2131_v13, %v366_v28 }
  0xbb   : > { %v383_v31 = vmul.f32 %v2131_v13, %v362_v30 }
  0xbc   : > { %v2145_v32 = vsub.f32 %v354_v3, %v387_v29  ;;  %v2161_v40 = vsub.f32 %v352_v4, %v385_v35  ;;  %v554_v3 = vld [vmem:[#allocation7 + $0x30] sm:$0xff]  ;;  %v555_v4 = vld [vmem:[#allocation7 + $0x38] sm:$0xff] }
  0xbd   : > { %v2148_v34 = vsub.f32 %v350_v5, %v383_v31  ;;  %598 = vmatpush.msra.mxu0 %v554_v3  ;;  %639 = vmatpush.msra.mxu1 %v555_v4  ;;  %v552_v5 = vld [vmem:[#allocation7 + $0x20] sm:$0xff] }
  0xbe   : > { %v403_v36 = vmul.f32 %v2145_v32, %v2145_v32  ;;  %v401_v43 = vmul.f32 %v2161_v40, %v2161_v40 }
  0xbf   : > { %v399_v38 = vmul.f32 %v2148_v34, %v2148_v34  ;;  %599 = vmatpush.msra.mxu0 %v552_v5  ;;  %v1323_v5 = vld [vmem:[#allocation8 + $0x78] sm:$0xff] }
  0xc0   : > { %416 = vadd.xlane.f32.xlu1 %v403_v36  ;;  %1344 = vmatpush.msra.mxu2 %v1323_v5 }
  0xc1   : > { %373 = vadd.xlane.f32.xlu0 %v2154_v37  ;;  %408 = vadd.xlane.f32.xlu2 %v399_v38  ;;  %v372_v41 = vpop.xlane.xlu1 %371 }
  0xc2   : > { %v388_v44 = vmul.f32 %v2131_v13, %v372_v41  ;;  %600 = vmatpush.msra.mxu0 %v550_v7 }
  0xc4   : > { %v2168_v45 = vsub.f32 %v355_v6, %v388_v44  ;;  %v553_v6 = vld [vmem:[#allocation7 + $0x28] sm:$0xff]  ;;  %601 = vmatpush.msra.mxu0 %v548_v9 }
  0xc5   : > { %640 = vmatpush.msra.mxu1 %v553_v6 }
  0xc6   : > { %v404_v46 = vmul.f32 %v2168_v45, %v2168_v45 }
  0xc7   : > { %641 = vmatpush.msra.mxu1 %v551_v8 }
  0xc9   : > { %414 = vadd.xlane.f32.xlu0 %v402_v42  ;;  %412 = vadd.xlane.f32.xlu2 %v401_v43 }
  0xca   : > { %642 = vmatpush.msra.mxu1 %v549_v10 }
  0xd1   : > { %418 = vadd.xlane.f32.xlu2 %v404_v46 }
 0x12b   : > { %v411_v11 = vpop.xlane.xlu1 %410 }
 0x12c   : > { %v424_v12 = vmul.f32 %v411_v11, %v2131_v13  ;;  %v407_v14 = vpop.xlane.xlu0 %406 }
 0x12d   : > { %v422_v15 = vmul.f32 %v407_v14, %v2131_v13 }
 0x12e   : > { %v432_v16 = vadd.f32 1e-05, %v424_v12 }
 0x12f   : > { %v430_v17 = vadd.f32 1e-05, %v422_v15 }
 0x130   : > { %1663 = vrsqrt.f32 %v432_v16  ;;  %vm464_vm6 = vweird.f32 %v432_v16 }
 0x131   : > { %1665 = vrsqrt.f32 %v430_v17  ;;  %vm444_vm2 = vweird.f32 %v430_v17 }
 0x133   : > { %v417_v33 = vpop.xlane.xlu1 %416 }
 0x134   : > { %v409_v18 = vpop.xlane.xlu2 %408  ;;  %v374_v19 = vpop.xlane.xlu0 %373  ;;  %v427_v46 = vmul.f32 %v417_v33, %v2131_v13 }
 0x135   : > { %v423_v20 = vmul.f32 %v409_v18, %v2131_v13  ;;  %v389_v21 = vmul.f32 %v2131_v13, %v374_v19 }
 0x136   : > { %v2176_v22 = vpop.eup %1663  ;;  %v2193_v55 = vadd.f32 1e-05, %v427_v46 }
 0x137   : > { %v1666_v25 = vpop.eup %1665  ;;  %v431_v26 = vadd.f32 1e-05, %v423_v20  ;;  %v2179_v27 = vsub.f32 %v2154_v37, %v389_v21  ;;  %v459_v28 = vmul.f32 %v2176_v22, %v432_v16  ;;  %vm465_vm7 = vweird.f32 %v2176_v22 }
 0x138   : > { %v439_v29 = vmul.f32 %v1666_v25, %v430_v17  ;;  %vm445_vm1 = vweird.f32 %v1666_v25  ;;  %vm2207_vm9 = vmor %vm464_vm6, %vm465_vm7  ;;  %vm494_vm0 = vweird.f32 %v2193_v55 }
 0x139   : > { %1667 = vrsqrt.f32 %v431_v26  ;;  %v405_v30 = vmul.f32 %v2179_v27, %v2179_v27  ;;  %v460_v35 = vmul.f32 %v2176_v22, %v459_v28  ;;  %vm446_vm3 = vmor %vm444_vm2, %vm445_vm1  ;;  %vm454_vm4 = vweird.f32 %v431_v26 }
 0x13a   : > { %v440_v31 = vmul.f32 %v1666_v25, %v439_v29 }
 0x13b   : > { %420 = vadd.xlane.f32.xlu0 %v405_v30  ;;  %v461_v48 = vmul.f32 0.5, %v460_v35 }
 0x13c   : > { %v441_v36 = vmul.f32 0.5, %v440_v31  ;;  %v413_v38 = vpop.xlane.xlu2 %412  ;;  %v415_v41 = vpop.xlane.xlu0 %414 }
 0x13d   : > { %v425_v42 = vmul.f32 %v413_v38, %v2131_v13  ;;  %v426_v37 = vmul.f32 %v415_v41, %v2131_v13  ;;  %v462_v58 = vsub.f32 1.5, %v461_v48 }
 0x13e   : > { %v442_v43 = vsub.f32 1.5, %v441_v36 }
 0x13f   : > { %v1668_v44 = vpop.eup %1667  ;;  %v433_v47 = vadd.f32 1e-05, %v425_v42  ;;  %v2188_v51 = vadd.f32 1e-05, %v426_v37  ;;  %v463_v2 = vmul.f32 %v2176_v22, %v462_v58 }
 0x140   : > { %v443_v49 = vmul.f32 %v1666_v25, %v442_v43  ;;  %v449_v50 = vmul.f32 %v1668_v44, %v431_v26  ;;  %vm455_vm5 = vweird.f32 %v1668_v44 }
 0x141   : > { %1669 = vrsqrt.f32 %v433_v47  ;;  %vm456_vm8 = vmor %vm454_vm4, %vm455_vm5  ;;  %v467_v14 = vsel %vm2207_vm9, %v2176_v22, %v463_v2  ;;  %vm474_vm10 = vweird.f32 %v433_v47  ;;  %vm484_vm13 = vweird.f32 %v2188_v51 }
 0x142   : > { %v450_v53 = vmul.f32 %v1668_v44, %v449_v50  ;;  %1671 = vrsqrt.f32 %v2188_v51  ;;  %v447_v54 = vsel %vm446_vm3, %v1666_v25, %v443_v49  ;;  %v520_v19 = vmul.f32 %v467_v14, %v2135_v23  ;;  %v1338_v14 = vld [vmem:[#allocation8 + $0xf0] sm:$0xff] }
 0x143   : > { %v518_v56 = vmul.f32 %v447_v54, %v2137_v24  ;;  %1673 = vrsqrt.f32 %v2193_v55 }
 0x144   : > { %v451_v59 = vmul.f32 0.5, %v450_v53  ;;  %v419_v60 = vpop.xlane.xlu2 %418  ;;  %v531_v22 = vmul.f32 %v2190_v52, %v520_v19 }
 0x145   : > { %v529_v61 = vmul.f32 %v2190_v52, %v518_v56  ;;  %v428_v24 = vmul.f32 %v419_v60, %v2131_v13 }
 0x146   : > { %v452_v62 = vsub.f32 1.5, %v451_v59  ;;  %v542_v30 = vadd.f32 %v2199_v57, %v531_v22 }
 0x147   : > { %v1670_v63 = vpop.eup %1669  ;;  %v540_v0 = vadd.f32 %v2199_v57, %v529_v61  ;;  %v436_v9 = vadd.f32 1e-05, %v428_v24 }
 0x148   : > { %v1672_v1 = vpop.eup %1671  ;;  %v453_v3 = vmul.f32 %v1668_v44, %v452_v62  ;;  %v469_v4 = vmul.f32 %v1670_v63, %v433_v47  ;;  %vm475_vm11 = vweird.f32 %v1670_v63 }
 0x149   : > { %v479_v6 = vmul.f32 %v1672_v1, %v2188_v51  ;;  %602 = vmatmul.f32.vlgmr.msra.gmra.mxu0 %v540_v0  ;;  %643 = vmatmul.f32.vlgmr.msra.gmra.mxu1 %v540_v0  ;;  %v1674_v15 = vpop.eup %1673  ;;  %1675 = vrsqrt.f32 %v436_v9  ;;  %vm476_vm12 = vmor %vm474_vm10, %vm475_vm11  ;;  %vm485_vm14 = vweird.f32 %v1672_v1  ;;  %vm504_vm3 = vweird.f32 %v436_v9 }
 0x14a   : > { %v470_v7 = vmul.f32 %v1670_v63, %v469_v4  ;;  %v457_v8 = vsel %vm456_vm8, %v1668_v44, %v453_v3  ;;  %v489_v20 = vmul.f32 %v1674_v15, %v2193_v55  ;;  %vm486_vm15 = vmor %vm484_vm13, %vm485_vm14  ;;  %vm495_vm1 = vweird.f32 %v1674_v15 }
 0x14b   : > { %v519_v10 = vmul.f32 %v457_v8, %v2148_v34  ;;  %v480_v12 = vmul.f32 %v1672_v1, %v479_v6  ;;  %vm496_vm2 = vmor %vm494_vm0, %vm495_vm1  ;;  %v1339_v6 = vld [vmem:[#allocation8 + $0xf8] sm:$0xff] }
 0x14c   : > { %v471_v11 = vmul.f32 0.5, %v470_v7  ;;  %v490_v25 = vmul.f32 %v1674_v15, %v489_v20  ;;  %1385 = vmatpush.msra.mxu3 %v1339_v6  ;;  %v1320_v20 = vld [vmem:[#allocation8 + $0x60] sm:$0xff] }
 0x14d   : > { %v530_v16 = vmul.f32 %v2190_v52, %v519_v10  ;;  %v481_v21 = vmul.f32 0.5, %v480_v12  ;;  %v1322_v12 = vld [vmem:[#allocation8 + $0x70] sm:$0xff] }
 0x14e   : > { %v472_v17 = vsub.f32 1.5, %v471_v11  ;;  %v491_v31 = vmul.f32 0.5, %v490_v25  ;;  %1345 = vmatpush.msra.mxu2 %v1322_v12  ;;  %1386 = vmatpush.msra.mxu3 %v1338_v14  ;;  %v1311_v14 = vld [vmem:[#allocation8 + $0x18] sm:$0xff] }
 0x14f   : > { %v541_v18 = vadd.f32 %v2199_v57, %v530_v16  ;;  %v482_v26 = vsub.f32 1.5, %v481_v21  ;;  %v1676_v29 = vpop.eup %1675 }
 0x150   : > { %v473_v34 = vmul.f32 %v1670_v63, %v472_v17  ;;  %v499_v35 = vmul.f32 %v1676_v29, %v436_v9  ;;  %v492_v38 = vsub.f32 1.5, %v491_v31  ;;  %vm505_vm4 = vweird.f32 %v1676_v29  ;;  %v1321_v17 = vld [vmem:[#allocation8 + $0x68] sm:$0xff] }
 0x151   : > { %605 = vmatmul.f32.gmra.mxu0 %v541_v18  ;;  %646 = vmatmul.f32.gmra.mxu1 %v541_v18  ;;  %v483_v33 = vmul.f32 %v1672_v1, %v482_v26  ;;  %vm506_vm5 = vmor %vm504_vm3, %vm505_vm4  ;;  %v1337_v18 = vld [vmem:[#allocation8 + $0xe8] sm:$0xff]  ;;  %v1319_v26 = vld [vmem:[#allocation8 + $0x58] sm:$0xff] }
 0x152   : > { %v477_v28 = vsel %vm476_vm12, %v1670_v63, %v473_v34  ;;  %v500_v41 = vmul.f32 %v1676_v29, %v499_v35  ;;  %v493_v44 = vmul.f32 %v1674_v15, %v492_v38  ;;  %1346 = vmatpush.msra.mxu2 %v1321_v17  ;;  %1387 = vmatpush.msra.mxu3 %v1337_v18  ;;  %v1336_v34 = vld [vmem:[#allocation8 + $0xe0] sm:$0xff]  ;;  %v1317_v35 = vld [vmem:[#allocation8 + $0x48] sm:$0xff] }
 0x153   : > { %v521_v23 = vmul.f32 %v477_v28, %v2161_v40  ;;  %v487_v42 = vsel %vm486_vm15, %v1672_v1, %v483_v33  ;;  %v1335_v28 = vld [vmem:[#allocation8 + $0xd8] sm:$0xff] }
 0x154   : > { %v522_v43 = vmul.f32 %v487_v42, %v2158_v39  ;;  %v501_v40 = vmul.f32 0.5, %v500_v41  ;;  %v497_v48 = vsel %vm496_vm2, %v1674_v15, %v493_v44  ;;  %1347 = vmatpush.msra.mxu2 %v1320_v20  ;;  %1388 = vmatpush.msra.mxu3 %v1336_v34  ;;  %v1316_v42 = vld [vmem:[#allocation8 + $0x40] sm:$0xff]  ;;  %v1310_v20 = vld [vmem:[#allocation8 + $0x10] sm:$0xff] }
 0x155   : > { %v532_v36 = vmul.f32 %v2190_v52, %v521_v23  ;;  %v523_v50 = vmul.f32 %v497_v48, %v2145_v32  ;;  %v1326_v34 = vld [vmem:[#allocation8 + $0x90] sm:$0xff] }
 0x156   : > { %v533_v46 = vmul.f32 %v2190_v52, %v522_v43  ;;  %v502_v47 = vsub.f32 1.5, %v501_v40  ;;  %1348 = vmatpush.msra.mxu2 %v1319_v26  ;;  %1389 = vmatpush.msra.mxu3 %v1335_v28 }
 0x157   : > { %v543_v37 = vadd.f32 %v2199_v57, %v532_v36  ;;  %v534_v39 = vmul.f32 %v2190_v52, %v523_v50  ;;  %v1333_v36 = vld [vmem:[#allocation8 + $0xc8] sm:$0xff] }
 0x158   : > { %v544_v49 = vadd.f32 %v2199_v57, %v533_v46  ;;  %v503_v51 = vmul.f32 %v1676_v29, %v502_v47  ;;  %v1315_v46 = vld [vmem:[#allocation8 + $0x38] sm:$0xff] }
 0x159   : > { %608 = vmatmul.f32.gmra.mxu0 %v542_v30  ;;  %649 = vmatmul.f32.gmra.mxu1 %v542_v30  ;;  %v545_v54 = vadd.f32 %v2199_v57, %v534_v39  ;;  %v1331_v47 = vld [vmem:[#allocation8 + $0xb8] sm:$0xff]  ;;  %v1314_v39 = vld [vmem:[#allocation8 + $0x30] sm:$0xff] }
 0x15a   : > { %v507_v53 = vsel %vm506_vm5, %v1676_v29, %v503_v51  ;;  %v1334_v29 = vld [vmem:[#allocation8 + $0xd0] sm:$0xff] }
 0x15b   : > { %v524_v55 = vmul.f32 %v507_v53, %v2168_v45  ;;  %v580_v45 = vld [vmem:[%s3090_s4] sm:$0x3]  ;;  %1390 = vmatpush.msra.mxu3 %v1334_v29  ;;  %v1330_v53 = vld [vmem:[#allocation8 + $0xb0] sm:$0xff] }
 0x15c   : > { %v2240_v2 = vperm.slane %v580_v45, 0  ;;  %v2242_v3 = vperm.slane %v580_v45, 1  ;;  %v1312_v45 = vld [vmem:[#allocation8 + $0x20] sm:$0xff] }
 0x15d   : > { %v535_v56 = vmul.f32 %v2190_v52, %v524_v55  ;;  %1391 = vmatpush.msra.mxu3 %v1333_v36 }
 0x15e   : > { %3132 = vst [vmem:[#allocation15_spill] sm:$0xff] %v2240_v2 }
 0x15f   : > { %v546_v58 = vadd.f32 %v2199_v57, %v535_v56  ;;  %3133 = vst [vmem:[#allocation16_spill] sm:$0xff] %v2242_v3 }
 0x161   : > { %611 = vmatmul.f32.gmra.mxu0 %v543_v37  ;;  %652 = vmatmul.f32.gmra.mxu1 %v543_v37  ;;  %v1332_v37 = vld [vmem:[#allocation8 + $0xc0] sm:$0xff] }
 0x162   : > { %1392 = vmatpush.msra.mxu3 %v1332_v37 }
 0x164   : > { %1393 = vmatpush.msra.mxu3 %v1331_v47  ;;  %v1324_v47 = vld [vmem:[#allocation8 + $0x80] sm:$0xff] }
 0x166   : > { %1394 = vmatpush.msra.mxu3 %v1330_v53 }
 0x169   : > { %614 = vmatmul.f32.gmra.mxu0 %v544_v49  ;;  %655 = vmatmul.f32.gmra.mxu1 %v544_v49 }
 0x171   : > { %617 = vmatmul.f32.gmra.mxu0 %v545_v54  ;;  %658 = vmatmul.f32.gmra.mxu1 %v545_v54 }
 0x179   : > { %620 = vmatmul.f32.gmra.mxu0 %v546_v58  ;;  %661 = vmatmul.f32.gmra.mxu1 %v546_v58 }
 0x1ae   : > { %v421_v32 = vpop.xlane.xlu0 %420 }
 0x1af   : > { %v429_v59 = vmul.f32 %v421_v32, %v2131_v13  ;;  %v1313_v32 = vld [vmem:[#allocation8 + $0x28] sm:$0xff] }
 0x1b1   : > { %v437_v60 = vadd.f32 1e-05, %v429_v59  ;;  %v1329_v59 = vld [vmem:[#allocation8 + $0xa8] sm:$0xff] }
 0x1b2   : > { %1395 = vmatpush.msra.mxu3 %v1329_v59 }
 0x1b3   : > { %1677 = vrsqrt.f32 %v437_v60  ;;  %vm514_vm7 = vweird.f32 %v437_v60 }
 0x1b9   : > { %v1678_v61 = vpop.eup %1677 }
 0x1ba   : > { %v509_v62 = vmul.f32 %v1678_v61, %v437_v60  ;;  %vm515_vm6 = vweird.f32 %v1678_v61 }
 0x1bb   : > { %vm516_vm8 = vmor %vm514_vm7, %vm515_vm6 }
 0x1bc   : > { %v510_v63 = vmul.f32 %v1678_v61, %v509_v62 }
 0x1be   : > { %v511_v24 = vmul.f32 0.5, %v510_v63 }
 0x1c0   : > { %v512_v0 = vsub.f32 1.5, %v511_v24 }
 0x1c2   : > { %v513_v1 = vmul.f32 %v1678_v61, %v512_v0 }
 0x1c4   : > { %v517_v13 = vsel %vm516_vm8, %v1678_v61, %v513_v1  ;;  %v1328_v1 = vld [vmem:[#allocation8 + $0xa0] sm:$0xff] }
 0x1c5   : > { %v525_v4 = vmul.f32 %v517_v13, %v2179_v27  ;;  %1396 = vmatpush.msra.mxu3 %v1328_v1 }
 0x1c6   : > { %v603_v7 = vpop.f32.mrf.mxu0  ;;  %v644_v8 = vpop.f32.mrf.mxu1 }
 0x1c7   : > { %v2246_v9 = vadd.f32 %v603_v7, %v2240_v2  ;;  %v2249_v10 = vadd.f32 %v644_v8, %v2242_v3  ;;  %v536_v11 = vmul.f32 %v2190_v52, %v525_v4 }
 0x1c9   : > { %v2253_v27 = vmul.f32 0.70710677, %v2246_v9  ;;  %v2256_v15 = vmul.f32 0.70710677, %v2249_v10  ;;  %v547_v16 = vadd.f32 %v2199_v57, %v536_v11  ;;  %v1318_v57 = vld [vmem:[#allocation8 + $0x50] sm:$0xff]  ;;  %v2303_v13 = vmul.f32 0.5, %v2246_v9 }
 0x1ca   : > { %1349 = vmatpush.msra.mxu2 %v1318_v57  ;;  %v2308_v5 = vmul.f32 0.5, %v2249_v10 }
 0x1cb   : > { %v700_v19 = vand.u32 2147483647, %v2253_v27  ;;  %v701_v52 = vand.u32 2147483647, %v2256_v15  ;;  %623 = vmatmul.f32.gmra.mxu0 %v547_v16  ;;  %664 = vmatmul.f32.gmra.mxu1 %v547_v16  ;;  %v1327_v16 = vld [vmem:[#allocation8 + $0x98] sm:$0xff] }
 0x1cc   : > { %1350 = vmatpush.msra.mxu2 %v1317_v35  ;;  %1397 = vmatpush.msra.mxu3 %v1327_v16  ;;  %v1325_v35 = vld [vmem:[#allocation8 + $0x88] sm:$0xff] }
 0x1cd   : > { %v716_v21 = vmul.f32 0.3275911, %v700_v19  ;;  %v717_v23 = vmul.f32 0.3275911, %v701_v52  ;;  %v1132_v48 = vsub.f32 0.0, %v700_v19  ;;  %v1133_v54 = vsub.f32 0.0, %v701_v52 }
 0x1ce   : > { %v606_v22 = vpop.f32.mrf.mxu0  ;;  %v647_v25 = vpop.f32.mrf.mxu1  ;;  %1351 = vmatpush.msra.mxu2 %v1316_v42  ;;  %1398 = vmatpush.msra.mxu3 %v1326_v34 }
 0x1cf   : > { %v2261_v30 = vadd.f32 1.0, %v716_v21  ;;  %v2264_v31 = vadd.f32 %v606_v22, %v2240_v2  ;;  %v2267_v33 = vadd.f32 %v647_v25, %v2242_v3  ;;  %v2276_v43 = vadd.f32 1.0, %v717_v23  ;;  %v1309_v23 = vld [vmem:[#allocation8 + $0x8] sm:$0xff] }
 0x1d0   : > { %1352 = vmatpush.msra.mxu2 %v1315_v46  ;;  %v1148_v61 = vmul.f32 %v1132_v48, %v700_v19  ;;  %v1149_v63 = vmul.f32 %v1133_v54, %v701_v52  ;;  %1399 = vmatpush.msra.mxu3 %v1325_v35  ;;  %v1308_v46 = vld [vmem:[#allocation8] sm:$0xff] }
 0x1d1   : > { %v2270_v38 = vmul.f32 0.70710677, %v2264_v31  ;;  %v2273_v41 = vmul.f32 0.70710677, %v2267_v33  ;;  %1679 = vrcp.f32 %v2261_v30  ;;  %v759_v21 = vand.u32 2147483648, %v2261_v30 }
 0x1d2   : > { %1681 = vrcp.f32 %v2276_v43  ;;  %1353 = vmatpush.msra.mxu2 %v1314_v39  ;;  %v1164_v8 = vmul.f32 1.442695, %v1148_v61  ;;  %v1166_v19 = vmul.f32 1.442695, %v1149_v63  ;;  %v2332_v26 = vmul.f32 0.5, %v2264_v31  ;;  %1400 = vmatpush.msra.mxu3 %v1324_v47 }
 0x1d3   : > { %v2279_v44 = vand.u32 2147483647, %v2270_v38  ;;  %v2282_v40 = vand.u32 2147483647, %v2273_v41  ;;  %v2335_v28 = vmul.f32 0.5, %v2267_v33  ;;  %vm753_vm9 = vweird.f32 %v2261_v30 }
 0x1d4   : > { %1354 = vmatpush.msra.mxu2 %v1313_v32  ;;  %v757_v33 = vand.u32 2147483647, %v2261_v30  ;;  %v2349_v48 = vor.u32 1.1754944e-38, %v759_v21  ;;  %vm768_vm11 = vweird.f32 %v2276_v43 }
 0x1d5   : > { %v718_v51 = vmul.f32 0.3275911, %v2279_v44  ;;  %v719_v55 = vmul.f32 0.3275911, %v2282_v40  ;;  %v1134_v10 = vsub.f32 0.0, %v2279_v44  ;;  %v1135_v52 = vsub.f32 0.0, %v2282_v40 }
 0x1d6   : > { %v609_v49 = vpop.f32.mrf.mxu0  ;;  %v650_v50 = vpop.f32.mrf.mxu1  ;;  %1355 = vmatpush.msra.mxu2 %v1312_v45  ;;  %3135 = vst [vmem:[#allocation18_spill] sm:$0xff] %v2335_v28  ;;  %vm2408_vm12 = vcmp.eq.f32.partialorder %v757_v33, 8.507059e+37 }
 0x1d7   : > { %v2288_v56 = vadd.f32 %v609_v49, %v2240_v2  ;;  %v2291_v58 = vadd.f32 %v650_v50, %v2242_v3  ;;  %v2293_v60 = vpop.eup %1679  ;;  %v2295_v62 = vadd.f32 1.0, %v718_v51  ;;  %v2297_v24 = vadd.f32 1.0, %v719_v55 }
 0x1d8   : > { %v749_v4 = vmul.f32 %v2293_v60, %v2261_v30  ;;  %v2313_v7 = vpop.eup %1681  ;;  %1356 = vmatpush.msra.mxu2 %v1311_v14  ;;  %v1150_v36 = vmul.f32 %v1134_v10, %v2279_v44  ;;  %v1151_v37 = vmul.f32 %v1135_v52, %v2282_v40  ;;  %vm754_vm10 = vweird.f32 %v2293_v60 }
 0x1d9   : > { %v2300_v0 = vmul.f32 0.70710677, %v2288_v56  ;;  %v2311_v6 = vmul.f32 0.70710677, %v2291_v58  ;;  %1683 = vrcp.f32 %v2295_v62  ;;  %v764_v25 = vmul.f32 %v2313_v7, %v2276_v43  ;;  %vm2416_vm13 = vmor %vm753_vm9, %vm754_vm10 }
 0x1da   : > { %1685 = vrcp.f32 %v2297_v24  ;;  %v750_v22 = vsub.f32 1.0, %v749_v4  ;;  %1357 = vmatpush.msra.mxu2 %v1310_v20  ;;  %v2355_v51 = vmul.f32 0.5, %v2288_v56  ;;  %v1168_v56 = vmul.f32 1.442695, %v1150_v36 }
 0x1db   : > { %3134 = vst [vmem:[#allocation17_spill] sm:$0xff] %v2311_v6  ;;  %v2316_v11 = vand.u32 2147483647, %v2300_v0  ;;  %v2321_v17 = vand.u32 2147483647, %v2311_v6  ;;  %1687 = vpow2.f32 %v1164_v8  ;;  %v765_v50 = vsub.f32 1.0, %v764_v25 }
 0x1dc   : > { %1358 = vmatpush.msra.mxu2 %v1309_v23  ;;  %1689 = vpow2.f32 %v1166_v19  ;;  %3137 = vst [vmem:[#allocation20_spill] sm:$0xff] %v2355_v51  ;;  %v751_v40 = vmul.f32 %v2293_v60, %v750_v22  ;;  %v2403_v35 = vmul.f32 0.5, %v2291_v58  ;;  %vm769_vm14 = vweird.f32 %v2313_v7 }
 0x1dd   : > { %v720_v57 = vmul.f32 0.3275911, %v2316_v11  ;;  %v721_v42 = vmul.f32 0.3275911, %v2321_v17  ;;  %v1136_v39 = vsub.f32 0.0, %v2316_v11  ;;  %v1137_v55 = vsub.f32 0.0, %v2321_v17  ;;  %vm2478_vm15 = vmor %vm768_vm11, %vm769_vm14 }
 0x1de   : > { %v612_v12 = vpop.f32.mrf.mxu0  ;;  %v653_v9 = vpop.f32.mrf.mxu1  ;;  %1359 = vmatpush.msra.mxu2 %v1308_v46  ;;  %v766_v34 = vmul.f32 %v2313_v7, %v765_v50  ;;  %v752_v22 = vadd.f32 %v2293_v60, %v751_v40  ;;  %3140 = vst [vmem:[#allocation23_spill] sm:$0xff] %v2403_v35  ;;  %vm783_vm1 = vweird.f32 %v2295_v62  ;;  %vm798_vm2 = vweird.f32 %v2297_v24 }
 0x1df   : > { %v2324_v18 = vadd.f32 %v612_v12, %v2240_v2  ;;  %v2344_v31 = vadd.f32 %v653_v9, %v2242_v3  ;;  %v2352_v49 = vpop.eup %1683  ;;  %v2362_v54 = vadd.f32 1.0, %v720_v57  ;;  %v2366_v63 = vadd.f32 1.0, %v721_v42 }
 0x1e0   : > { %v2359_v53 = vpop.eup %1685  ;;  %v779_v8 = vmul.f32 %v2352_v49, %v2295_v62  ;;  %v1170_v12 = vmul.f32 1.442695, %v1151_v37  ;;  %v1152_v10 = vmul.f32 %v1136_v39, %v2316_v11  ;;  %v1153_v21 = vmul.f32 %v1137_v55, %v2321_v17 }
 0x1e1   : > { %v2339_v29 = vmul.f32 0.70710677, %v2324_v18  ;;  %v2369_v45 = vmul.f32 0.70710677, %v2344_v31  ;;  %v2374_v4 = vpop.eup %1687  ;;  %v794_v16 = vmul.f32 %v2359_v53, %v2297_v24  ;;  %1691 = vrcp.f32 %v2362_v54 }
 0x1e2   : > { %v2390_v20 = vpop.eup %1689  ;;  %1693 = vrcp.f32 %v2366_v63  ;;  %v780_v23 = vsub.f32 1.0, %v779_v8  ;;  %v1172_v37 = vmul.f32 1.442695, %v1152_v10  ;;  %v1174_v58 = vmul.f32 1.442695, %v1153_v21 }
 0x1e3   : > { %3136 = vst [vmem:[#allocation19_spill] sm:$0xff] %v2339_v29  ;;  %v706_v32 = vand.u32 2147483647, %v2339_v29  ;;  %v2385_v19 = vand.u32 2147483647, %v2369_v45  ;;  %1695 = vpow2.f32 %v1168_v56  ;;  %v795_v42 = vsub.f32 1.0, %v794_v16 }
 0x1e4   : > { %3138 = vst [vmem:[#allocation21_spill] sm:$0xff] %v2369_v45  ;;  %1697 = vpow2.f32 %v1170_v12  ;;  %v756_v33 = vsel %vm2416_vm13, %v2293_v60, %v752_v22  ;;  %v2425_v55 = vmul.f32 0.5, %v2324_v18  ;;  %v2436_v56 = vmul.f32 %v2352_v49, %v780_v23 }
 0x1e5   : > { %v722_v9 = vmul.f32 0.3275911, %v706_v32  ;;  %v723_v25 = vmul.f32 0.3275911, %v2385_v19  ;;  %v1138_v50 = vsub.f32 0.0, %v706_v32  ;;  %v2439_v8 = vmul.f32 0.5, %v2344_v31 }
 0x1e6   : > { %v615_v59 = vpop.f32.mrf.mxu0  ;;  %v656_v61 = vpop.f32.mrf.mxu1  ;;  %3146 = vst [vmem:[#allocation25_spill] sm:$0xff] %v2425_v55  ;;  %v1139_v21 = vsub.f32 0.0, %v2385_v19  ;;  %vm784_vm3 = vweird.f32 %v2352_v49  ;;  %vm813_vm4 = vweird.f32 %v2362_v54  ;;  %vm799_vm6 = vweird.f32 %v2359_v53 }
 0x1e7   : > { %v2372_v1 = vadd.f32 %v615_v59, %v2240_v2  ;;  %v2379_v14 = vadd.f32 %v656_v61, %v2242_v3  ;;  %v2398_v11 = vadd.f32 1.0, %v722_v9  ;;  %v2428_v30 = vadd.f32 1.0, %v723_v25  ;;  %v2433_v61 = vpop.eup %1691  ;;  %3147 = vst [vmem:[#allocation26_spill] sm:$0xff] %v2439_v8  ;;  %vm2624_vm5 = vmor %vm783_vm1, %vm784_vm3 }
 0x1e8   : > { %v2431_v59 = vadd.f32 %v2313_v7, %v766_v34  ;;  %v2444_v12 = vpop.eup %1693  ;;  %v2447_v9 = vmul.f32 %v2359_v53, %v795_v42  ;;  %v1154_v31 = vmul.f32 %v1138_v50, %v706_v32  ;;  %v809_v23 = vmul.f32 %v2433_v61, %v2362_v54  ;;  %vm2644_vm9 = vmor %vm798_vm2, %vm799_vm6 }
 0x1e9   : > { %v2388_v52 = vmul.f32 0.70710677, %v2372_v1  ;;  %v2406_v36 = vmul.f32 0.70710677, %v2379_v14  ;;  %1699 = vrcp.f32 %v2398_v11  ;;  %v2455_v34 = vpop.eup %1695  ;;  %vm828_vm7 = vweird.f32 %v2366_v63 }
 0x1ea   : > { %1701 = vpow2.f32 %v1172_v37  ;;  %v2458_v25 = vpop.eup %1697  ;;  %vm1228_vm11 = vcmp.ge.f32.partialorder %v2253_v27, 0.0  ;;  %vm843_vm14 = vweird.f32 %v2398_v11  ;;  %vm1229_vm2 = vcmp.ge.f32.partialorder %v2256_v15, 0.0 }
 0x1eb   : > { %3139 = vst [vmem:[#allocation22_spill] sm:$0xff] %v2388_v52  ;;  %v708_v57 = vand.u32 2147483647, %v2388_v52  ;;  %v709_v18 = vand.u32 2147483647, %v2406_v36  ;;  %1703 = vpow2.f32 %v1174_v58  ;;  %vm858_vm3 = vweird.f32 %v2428_v30 }
 0x1ec   : > { %3141 = vst [vmem:[#allocation24_spill] sm:$0xff] %v2406_v36  ;;  %1705 = vrcp.f32 %v2428_v30 }
 0x1ed   : > { %v724_v46 = vmul.f32 0.3275911, %v708_v57  ;;  %v725_v22 = vmul.f32 0.3275911, %v709_v18  ;;  %v1140_v42 = vsub.f32 0.0, %v708_v57 }
 0x1ee   : > { %v618_v39 = vpop.f32.mrf.mxu0  ;;  %v659_v40 = vpop.f32.mrf.mxu1 }
 0x1ef   : > { %v2441_v60 = vadd.f32 1.0, %v724_v46  ;;  %v2450_v16 = vadd.f32 %v618_v39, %v2240_v2  ;;  %v2453_v10 = vadd.f32 %v659_v40, %v2242_v3  ;;  %v824_v46 = vmul.f32 %v2444_v12, %v2366_v63  ;;  %v2482_v50 = vpop.eup %1699 }
 0x1f0   : > { %v2469_v32 = vadd.f32 1.0, %v725_v22  ;;  %v1141_v39 = vsub.f32 0.0, %v709_v18  ;;  %v2488_v22 = vsel %vm2408_vm12, %v2349_v48, %v756_v33  ;;  %v2497_v36 = vpop.eup %1701  ;;  %v1156_v55 = vmul.f32 %v1140_v42, %v708_v57 }
 0x1f1   : > { %3148 = vst [vmem:[#allocation27_spill] sm:$0xff] %v2450_v16  ;;  %v2464_v37 = vmul.f32 0.70710677, %v2450_v16  ;;  %1707 = vrcp.f32 %v2441_v60  ;;  %v2472_v47 = vmul.f32 0.70710677, %v2453_v10  ;;  %v1155_v16 = vmul.f32 %v1139_v21, %v2385_v19  ;;  %v2499_v33 = vpop.eup %1703 }
 0x1f2   : > { %3149 = vst [vmem:[#allocation28_spill] sm:$0xff] %v2453_v10  ;;  %v1176_v10 = vmul.f32 1.442695, %v1154_v31  ;;  %1709 = vrcp.f32 %v2469_v32  ;;  %v825_v45 = vsub.f32 1.0, %v824_v46  ;;  %v839_v44 = vmul.f32 %v2482_v50, %v2398_v11  ;;  %v2506_v21 = vpop.eup %1705 }
 0x1f3   : > { %3150 = vst [vmem:[#allocation29_spill] sm:$0xff] %v2464_v37  ;;  %v710_v40 = vand.u32 2147483647, %v2464_v37  ;;  %v711_v8 = vand.u32 2147483647, %v2472_v47  ;;  %v810_v37 = vsub.f32 1.0, %v809_v23  ;;  %v1157_v23 = vmul.f32 %v1141_v39, %v709_v18 }
 0x1f4   : > { %3151 = vst [vmem:[#allocation30_spill] sm:$0xff] %v2472_v47  ;;  %v2504_v31 = vmul.f32 0.5, %v2372_v1  ;;  %v2509_v47 = vmul.f32 0.5, %v2379_v14  ;;  %1711 = vpow2.f32 %v1176_v10  ;;  %v1178_v46 = vmul.f32 1.442695, %v1155_v16 }
 0x1f5   : > { %v726_v52 = vmul.f32 0.3275911, %v710_v40  ;;  %v1142_v17 = vsub.f32 0.0, %v710_v40  ;;  %3154 = vst [vmem:[#allocation31_spill] sm:$0xff] %v2499_v33  ;;  %v727_v19 = vmul.f32 0.3275911, %v711_v8  ;;  %v2521_v1 = vmul.f32 %v2433_v61, %v810_v37 }
 0x1f6   : > { %v621_v48 = vpop.f32.mrf.mxu0  ;;  %3155 = vst [vmem:[#allocation32_spill] sm:$0xff] %v2504_v31  ;;  %v1143_v42 = vsub.f32 0.0, %v711_v8  ;;  %v1180_v31 = vmul.f32 1.442695, %v1156_v55  ;;  %v662_v18 = vpop.f32.mrf.mxu1  ;;  %v2533_v10 = vmul.f32 %v2444_v12, %v825_v45  ;;  %v854_v37 = vmul.f32 %v2506_v21, %v2428_v30 }
 0x1f7   : > { %3156 = vst [vmem:[#allocation33_spill] sm:$0xff] %v2509_v47  ;;  %v2511_v57 = vadd.f32 1.0, %v726_v52  ;;  %v2513_v35 = vpop.eup %1707  ;;  %v2515_v51 = vadd.f32 1.0, %v727_v19  ;;  %v2518_v29 = vadd.f32 %v621_v48, %v2240_v2  ;;  %v1158_v14 = vmul.f32 %v1142_v17, %v710_v40 }
 0x1f8   : > { %v3158_v52 = vand.u32 2147483647, %v2276_v43  ;;  %v2530_v16 = vpop.eup %1709  ;;  %v840_v48 = vsub.f32 1.0, %v839_v44  ;;  %v869_v55 = vmul.f32 %v2513_v35, %v2441_v60  ;;  %v1182_v40 = vmul.f32 1.442695, %v1157_v23 }
 0x1f9   : > { %3157 = vst [vmem:[#allocation34_spill] sm:$0xff] %v2518_v29  ;;  %1713 = vrcp.f32 %v2511_v57  ;;  %v1159_v17 = vmul.f32 %v1143_v42, %v711_v8  ;;  %v2541_v19 = vmul.f32 0.70710677, %v2518_v29  ;;  %v988_v45 = vmul.f32 1.0614054, %v2488_v22 }
 0x1fa   : > { %vm2526_vm0 = vcmp.eq.f32.partialorder %v3158_v52, 8.507059e+37  ;;  %1715 = vrcp.f32 %v2515_v51  ;;  %v2544_v52 = vadd.f32 %v662_v18, %v2242_v3  ;;  %v774_v44 = vand.u32 2147483648, %v2276_v43  ;;  %v2553_v8 = vpop.eup %1711 }
 0x1fb   : > { %3161 = vst [vmem:[#allocation35_spill] sm:$0xff] %v2541_v19  ;;  %1717 = vpow2.f32 %v1178_v46  ;;  %v884_v47 = vmul.f32 %v2530_v16, %v2469_v32  ;;  %v1184_v2 = vmul.f32 1.442695, %v1158_v14  ;;  %v2551_v33 = vand.u32 2147483647, %v2541_v19 }
 0x1fc   : > { %3162 = vst [vmem:[#allocation36_spill] sm:$0xff] %v2544_v52  ;;  %1719 = vpow2.f32 %v1180_v31  ;;  %v2557_v23 = vmul.f32 %v2482_v50, %v840_v48  ;;  %v855_v42 = vsub.f32 1.0, %v854_v37  ;;  %v2560_v46 = vmul.f32 0.70710677, %v2544_v52 }
 0x1fd   : > { %3163 = vst [vmem:[#allocation37_spill] sm:$0xff] %v2551_v33  ;;  %v1004_v43 = vadd.f32 -1.4531521, %v988_v45  ;;  %v870_v18 = vsub.f32 1.0, %v869_v55  ;;  %1721 = vpow2.f32 %v1182_v40  ;;  %v1186_v14 = vmul.f32 1.442695, %v1159_v17 }
 0x1fe   : > { %3164 = vst [vmem:[#allocation38_spill] sm:$0xff] %v2553_v8  ;;  %v728_v29 = vmul.f32 0.3275911, %v2551_v33  ;;  %v2571_v37 = vand.u32 2147483647, %v2560_v46  ;;  %v775_v45 = vor.u32 1.1754944e-38, %v774_v44  ;;  %1723 = vpow2.f32 %v1184_v2 }
 0x1ff   : > { %3165 = vst [vmem:[#allocation39_spill] sm:$0xff] %v2560_v46  ;;  %v2562_v31 = vpop.eup %1713  ;;  %v1020_v52 = vmul.f32 %v1004_v43, %v2488_v22  ;;  %v885_v3 = vsub.f32 1.0, %v884_v47  ;;  %v3167_v46 = vsel %vm2478_vm15, %v2313_v7, %v2431_v59  ;;  %v2596_v44 = vmul.f32 %v2513_v35, %v870_v18 }
 0x200   : > { %v2565_v19 = vpop.eup %1715  ;;  %v899_v48 = vmul.f32 %v2562_v31, %v2511_v57  ;;  %3166 = vst [vmem:[#allocation40_spill] sm:$0xff] %v2571_v37  ;;  %v2576_v40 = vadd.f32 1.0, %v728_v29  ;;  %v729_v28 = vmul.f32 0.3275911, %v2571_v37  ;;  %v2588_v47 = vsel %vm2526_vm0, %v775_v45, %v3167_v46 }
 0x201   : > { %v914_v55 = vmul.f32 %v2565_v19, %v2515_v51  ;;  %v2578_v17 = vpop.eup %1717  ;;  %v1036_v6 = vadd.f32 1.4214138, %v1020_v52  ;;  %v2593_v29 = vmul.f32 %v2506_v21, %v855_v42  ;;  %v782_v7 = vadd.f32 %v2352_v49, %v2436_v56 }
 0x202   : > { %v900_v8 = vsub.f32 1.0, %v899_v48  ;;  %v2590_v2 = vpop.eup %1719  ;;  %1725 = vrcp.f32 %v2576_v40  ;;  %v2599_v52 = vadd.f32 1.0, %v729_v28  ;;  %v2609_v39 = vmul.f32 %v2530_v16, %v885_v3 }
 0x203   : > { %v915_v43 = vsub.f32 1.0, %v914_v55  ;;  %v1052_v58 = vmul.f32 %v1036_v6, %v2488_v22  ;;  %v2605_v59 = vpop.eup %1721  ;;  %1727 = vpow2.f32 %v1186_v14  ;;  %v989_v28 = vmul.f32 1.0614054, %v2588_v47 }
 0x204   : > { %v2614_v46 = vmul.f32 %v2562_v31, %v900_v8  ;;  %1729 = vrcp.f32 %v2599_v52  ;;  %v2620_v18 = vpop.eup %1723  ;;  %v787_v14 = vand.u32 2147483647, %v2295_v62  ;;  %v789_v8 = vand.u32 2147483648, %v2295_v62 }
 0x205   : > { %v2617_v6 = vmul.f32 %v2565_v19, %v915_v43  ;;  %v1068_v56 = vadd.f32 -0.28449672, %v1052_v58  ;;  %3168 = vst [vmem:[#allocation41_spill] sm:$0xff] %v2620_v18  ;;  %v1005_v48 = vadd.f32 -1.4531521, %v989_v28  ;;  %v797_v45 = vadd.f32 %v2359_v53, %v2447_v9 }
 0x206   : > { %v786_v43 = vsel %vm2624_vm5, %v2352_v49, %v782_v7  ;;  %v802_v58 = vand.u32 2147483647, %v2297_v24  ;;  %vm788_vm8 = vcmp.eq.f32.partialorder %v787_v14, 8.507059e+37  ;;  %v790_v62 = vor.u32 1.1754944e-38, %v789_v8 }
 0x207   : > { %v1084_v55 = vmul.f32 %v1068_v56, %v2488_v22  ;;  %v1021_v42 = vmul.f32 %v1005_v48, %v2588_v47  ;;  %v804_v49 = vand.u32 2147483648, %v2297_v24  ;;  %v801_v3 = vsel %vm2644_vm9, %v2359_v53, %v797_v45 }
 0x208   : > { %v2638_v28 = vpop.eup %1725  ;;  %vm803_vm10 = vcmp.eq.f32.partialorder %v802_v58, 8.507059e+37  ;;  %v2657_v8 = vsel %vm788_vm8, %v790_v62, %v786_v43  ;;  %v812_v24 = vadd.f32 %v2433_v61, %v2521_v1  ;;  %vm814_vm12 = vweird.f32 %v2433_v61 }
 0x209   : > { %v929_v7 = vmul.f32 %v2638_v28, %v2576_v40  ;;  %v1100_v56 = vadd.f32 0.2548296, %v1084_v55  ;;  %v2654_v48 = vpop.eup %1727  ;;  %v1037_v14 = vadd.f32 1.4214138, %v1021_v42  ;;  %v805_v18 = vor.u32 1.1754944e-38, %v804_v49  ;;  %vm2679_vm13 = vmor %vm813_vm4, %vm814_vm12 }
 0x20a   : > { %v2661_v37 = vpop.eup %1729  ;;  %v990_v9 = vmul.f32 1.0614054, %v2657_v8  ;;  %v817_v43 = vand.u32 2147483647, %v2362_v54  ;;  %vm829_vm0 = vweird.f32 %v2444_v12  ;;  %v834_v49 = vand.u32 2147483648, %v2366_v63 }
 0x20b   : > { %v930_v33 = vsub.f32 1.0, %v929_v7  ;;  %v1116_v55 = vmul.f32 %v1100_v56, %v2488_v22  ;;  %v944_v53 = vmul.f32 %v2661_v37, %v2599_v52  ;;  %v1053_v42 = vmul.f32 %v1037_v14, %v2588_v47  ;;  %vm2703_vm1 = vmor %vm828_vm7, %vm829_vm0 }
 0x20c   : > { %v2669_v45 = vsel %vm803_vm10, %v805_v18, %v801_v3  ;;  %v1006_v62 = vadd.f32 -1.4531521, %v990_v9  ;;  %vm2687_vm15 = vcmp.eq.f32.partialorder %v817_v43, 8.507059e+37  ;;  %v835_v27 = vor.u32 1.1754944e-38, %v834_v49 }
 0x20d   : > { %v2673_v1 = vmul.f32 %v2638_v28, %v930_v33  ;;  %v1196_v58 = vmul.f32 %v2374_v4, %v1116_v55  ;;  %v991_v22 = vmul.f32 1.0614054, %v2669_v45  ;;  %v945_v18 = vsub.f32 1.0, %v944_v53 }
 0x20e   : > { %v1069_v7 = vadd.f32 -0.28449672, %v1053_v42  ;;  %v816_v33 = vsel %vm2679_vm13, %v2433_v61, %v812_v24  ;;  %v1022_v3 = vmul.f32 %v1006_v62, %v2657_v8  ;;  %v819_v55 = vand.u32 2147483648, %v2362_v54 }
 0x20f   : > { %v1212_v4 = vsub.f32 1.0, %v1196_v58  ;;  %v1007_v14 = vadd.f32 -1.4531521, %v991_v22  ;;  %v2694_v9 = vmul.f32 %v2661_v37, %v945_v18  ;;  %v827_v42 = vadd.f32 %v2444_v12, %v2533_v10 }
 0x210   : > { %v1085_v53 = vmul.f32 %v1069_v7, %v2588_v47  ;;  %v1038_v24 = vadd.f32 1.4214138, %v1022_v3  ;;  %v820_v58 = vor.u32 1.1754944e-38, %v819_v55  ;;  %v832_v10 = vand.u32 2147483647, %v2366_v63 }
 0x211   : > { %v1244_v61 = vsub.f32 0.0, %v1212_v4  ;;  %v1023_v43 = vmul.f32 %v1007_v14, %v2669_v45  ;;  %v831_v22 = vsel %vm2703_vm1, %v2444_v12, %v827_v42  ;;  %vm844_vm5 = vweird.f32 %v2482_v50 }
 0x212   : > { %v1101_v54 = vadd.f32 0.2548296, %v1085_v53  ;;  %v1054_v7 = vmul.f32 %v1038_v24, %v2657_v8  ;;  %v2718_v14 = vsel %vm2687_vm15, %v820_v58, %v816_v33  ;;  %vm833_vm4 = vcmp.eq.f32.partialorder %v832_v10, 8.507059e+37  ;;  %vm2734_vm6 = vmor %vm843_vm14, %vm844_vm5 }
 0x213   : > { %v1260_v18 = vsel %vm1228_vm11, %v1212_v4, %v1244_v61  ;;  %v1039_v3 = vadd.f32 1.4214138, %v1023_v43  ;;  %v992_v53 = vmul.f32 1.0614054, %v2718_v14  ;;  %v842_v4 = vadd.f32 %v2482_v50, %v2557_v23 }
 0x214   : > { %v1276_v55 = vadd.f32 1.0, %v1260_v18  ;;  %v1117_v12 = vmul.f32 %v1101_v54, %v2588_v47  ;;  %v1070_v63 = vadd.f32 -0.28449672, %v1054_v7  ;;  %v2730_v43 = vsel %vm833_vm4, %v835_v27, %v831_v22 }
 0x215   : > { %v1055_v42 = vmul.f32 %v1039_v3, %v2669_v45  ;;  %v1008_v56 = vadd.f32 -1.4531521, %v992_v53  ;;  %v847_v23 = vand.u32 2147483647, %v2398_v11  ;;  %v993_v62 = vmul.f32 1.0614054, %v2730_v43 }
 0x216   : > { %v1292_v61 = vmul.f32 %v1276_v55, %v2303_v13  ;;  %v1197_v33 = vmul.f32 %v2390_v20, %v1117_v12  ;;  %v1086_v24 = vmul.f32 %v1070_v63, %v2657_v8  ;;  %v846_v54 = vsel %vm2734_vm6, %v2482_v50, %v842_v4 }
 0x217   : > { %v1071_v47 = vadd.f32 -0.28449672, %v1055_v42  ;;  %v1024_v20 = vmul.f32 %v1008_v56, %v2718_v14  ;;  %vm873_vm7 = vweird.f32 %v2441_v60  ;;  %vm2746_vm8 = vcmp.eq.f32.partialorder %v847_v23, 8.507059e+37 }
 0x218   : > { %1360 = vmatmul.f32.vlgmr.msra.gmra.mxu2 %v1292_v61  ;;  %v1213_v13 = vsub.f32 1.0, %v1197_v33  ;;  %v1102_v22 = vadd.f32 0.2548296, %v1086_v24  ;;  %v849_v18 = vand.u32 2147483648, %v2398_v11  ;;  %vm1230_vm9 = vcmp.ge.f32.partialorder %v2270_v38, 0.0 }
 0x219   : > { %v1087_v10 = vmul.f32 %v1071_v47, %v2669_v45  ;;  %v1040_v3 = vadd.f32 1.4214138, %v1024_v20  ;;  %v1009_v55 = vadd.f32 -1.4531521, %v993_v62  ;;  %v857_v12 = vadd.f32 %v2506_v21, %v2593_v29 }
 0x21a   : > { %v1245_v7 = vsub.f32 0.0, %v1213_v13  ;;  %v1118_v50 = vmul.f32 %v1102_v22, %v2657_v8  ;;  %v850_v63 = vor.u32 1.1754944e-38, %v849_v18  ;;  %vm859_vm10 = vweird.f32 %v2506_v21 }
 0x21b   : > { %v1103_v53 = vadd.f32 0.2548296, %v1087_v10  ;;  %vm1231_vm11 = vcmp.ge.f32.partialorder %v2273_v41, 0.0  ;;  %v1056_v11 = vmul.f32 %v1040_v3, %v2718_v14  ;;  %v1025_v27 = vmul.f32 %v1009_v55, %v2730_v43  ;;  %vm2770_vm12 = vmor %vm858_vm3, %vm859_vm10  ;;  %v3191_v41 = vld [vmem:[#allocation17_spill] sm:$0xff] }
 0x21c   : > { %v1261_v42 = vsel %vm1229_vm2, %v1213_v13, %v1245_v7  ;;  %v862_v4 = vand.u32 2147483647, %v2428_v30  ;;  %v1198_v29 = vmul.f32 %v2455_v34, %v1118_v50  ;;  %v2766_v33 = vsel %vm2746_vm8, %v850_v63, %v846_v54 }
 0x21d   : > { %v1277_v61 = vadd.f32 1.0, %v1261_v42  ;;  %v1119_v8 = vmul.f32 %v1103_v53, %v2669_v45  ;;  %v1072_v56 = vadd.f32 -0.28449672, %v1056_v11  ;;  %v1041_v24 = vadd.f32 1.4214138, %v1025_v27 }
 0x21e   : > { %v994_v47 = vmul.f32 1.0614054, %v2766_v33  ;;  %v861_v34 = vsel %vm2770_vm12, %v2506_v21, %v857_v12  ;;  %v1214_v58 = vsub.f32 1.0, %v1198_v29  ;;  %vm2780_vm13 = vcmp.eq.f32.partialorder %v862_v4, 8.507059e+37 }
 0x21f   : > { %v1293_v45 = vmul.f32 %v1277_v61, %v2308_v5  ;;  %v1199_v23 = vmul.f32 %v2458_v25, %v1119_v8  ;;  %vm888_vm14 = vweird.f32 %v2469_v32  ;;  %v1088_v20 = vmul.f32 %v1072_v56, %v2718_v14 }
 0x220   : > { %v1057_v62 = vmul.f32 %v1041_v24, %v2730_v43  ;;  %v1010_v54 = vadd.f32 -1.4531521, %v994_v47  ;;  %v864_v22 = vand.u32 2147483648, %v2428_v30  ;;  %v1246_v21 = vsub.f32 0.0, %v1214_v58 }
 0x221   : > { %1401 = vmatmul.f32.vlgmr.msra.gmra.mxu3 %v1293_v45  ;;  %v1215_v10 = vsub.f32 1.0, %v1199_v23  ;;  %v872_v5 = vadd.f32 %v2513_v35, %v2596_v44  ;;  %vm874_vm15 = vweird.f32 %v2513_v35  ;;  %v1104_v25 = vadd.f32 0.2548296, %v1088_v20  ;;  %v3195_v20 = vld [vmem:[#allocation31_spill] sm:$0xff] }
 0x222   : > { %v1073_v49 = vadd.f32 -0.28449672, %v1057_v62  ;;  %v1026_v18 = vmul.f32 %v1010_v54, %v2766_v33  ;;  %v865_v7 = vor.u32 1.1754944e-38, %v864_v22  ;;  %vm2794_vm0 = vmor %vm873_vm7, %vm874_vm15  ;;  %vm1232_vm1 = vcmp.ge.f32.partialorder %v2300_v0, 0.0  ;;  %v3199_v0 = vld [vmem:[#allocation20_spill] sm:$0xff] }
 0x223   : > { %v1262_v30 = vsel %vm1230_vm9, %v1214_v58, %v1246_v21  ;;  %v1247_v55 = vsub.f32 0.0, %v1215_v10  ;;  %v876_v44 = vsel %vm2794_vm0, %v2513_v35, %v872_v5  ;;  %v877_v12 = vand.u32 2147483647, %v2441_v60 }
 0x224   : > { %v1278_v50 = vadd.f32 1.0, %v1262_v30  ;;  %v1120_v53 = vmul.f32 %v1104_v25, %v2718_v14  ;;  %v1089_v63 = vmul.f32 %v1073_v49, %v2730_v43  ;;  %v1042_v42 = vadd.f32 1.4214138, %v1026_v18 }
 0x225   : > { %v1263_v11 = vsel %vm1231_vm11, %v1215_v10, %v1247_v55  ;;  %v2811_v38 = vsel %vm2780_vm13, %v865_v7, %v861_v34  ;;  %vm2813_vm2 = vcmp.eq.f32.partialorder %v877_v12, 8.507059e+37  ;;  %v879_v35 = vand.u32 2147483648, %v2441_v60  ;;  %v3192_v60 = vld [vmem:[#allocation18_spill] sm:$0xff] }
 0x226   : > { %vm903_vm3 = vweird.f32 %v2511_v57  ;;  %v1294_v14 = vmul.f32 %v1278_v50, %v2332_v26  ;;  %v1279_v4 = vadd.f32 1.0, %v1263_v11  ;;  %v1200_v61 = vmul.f32 %v2497_v36, %v1120_v53 }
 0x227   : > { %v1105_v29 = vadd.f32 0.2548296, %v1089_v63  ;;  %vm1233_vm4 = vcmp.ge.f32.partialorder %v3191_v41, 0.0  ;;  %v1058_v8 = vmul.f32 %v1042_v42, %v2766_v33  ;;  %v995_v15 = vmul.f32 1.0614054, %v2811_v38 }
 0x228   : > { %v880_v56 = vor.u32 1.1754944e-38, %v879_v35  ;;  %v887_v24 = vadd.f32 %v2530_v16, %v2609_v39  ;;  %1363 = vmatmul.f32.gmra.mxu2 %v1294_v14  ;;  %v1295_v47 = vmul.f32 %v1279_v4, %v3192_v60  ;;  %v1216_v34 = vsub.f32 1.0, %v1200_v61  ;;  %v3202_v61 = vld [vmem:[#allocation38_spill] sm:$0xff] }
 0x229   : > { %v1121_v26 = vmul.f32 %v1105_v29, %v2730_v43  ;;  %vm889_vm5 = vweird.f32 %v2530_v16  ;;  %v1074_v36 = vadd.f32 -0.28449672, %v1058_v8  ;;  %v1011_v45 = vadd.f32 -1.4531521, %v995_v15 }
 0x22a   : > { %v2831_v58 = vsel %vm2813_vm2, %v880_v56, %v876_v44  ;;  %vm2835_vm6 = vmor %vm888_vm14, %vm889_vm5  ;;  %v892_v39 = vand.u32 2147483647, %v2469_v32  ;;  %1404 = vmatmul.f32.gmra.mxu3 %v1295_v47  ;;  %v1248_v13 = vsub.f32 0.0, %v1216_v34  ;;  %vm918_vm7 = vweird.f32 %v2515_v51  ;;  %v3198_v44 = vld [vmem:[#allocation19_spill] sm:$0xff] }
 0x22b   : > { %v1201_v43 = vmul.f32 %v3195_v20, %v1121_v26  ;;  %v996_v62 = vmul.f32 1.0614054, %v2831_v58  ;;  %v891_v54 = vsel %vm2835_vm6, %v2530_v16, %v887_v24  ;;  %v1090_v22 = vmul.f32 %v1074_v36, %v2766_v33  ;;  %v3205_v47 = vld [vmem:[#allocation23_spill] sm:$0xff] }
 0x22c   : > { %v1027_v21 = vmul.f32 %v1011_v45, %v2811_v38  ;;  %vm2848_vm8 = vcmp.eq.f32.partialorder %v892_v39, 8.507059e+37  ;;  %v894_v5 = vand.u32 2147483648, %v2469_v32  ;;  %v1264_v25 = vsel %vm1232_vm1, %v1216_v34, %v1248_v13 }
 0x22d   : > { %v1217_v49 = vsub.f32 1.0, %v1201_v43  ;;  %v1012_v18 = vadd.f32 -1.4531521, %v996_v62  ;;  %v902_v16 = vadd.f32 %v2562_v31, %v2614_v46  ;;  %v1280_v7 = vadd.f32 1.0, %v1264_v25  ;;  %v3208_v62 = vld [vmem:[#allocation21_spill] sm:$0xff] }
 0x22e   : > { %v1106_v3 = vadd.f32 0.2548296, %v1090_v22  ;;  %v1043_v30 = vadd.f32 1.4214138, %v1027_v21  ;;  %v895_v55 = vor.u32 1.1754944e-38, %v894_v5  ;;  %vm1234_vm9 = vcmp.ge.f32.partialorder %v3198_v44, 0.0 }
 0x22f   : > { %v1249_v12 = vsub.f32 0.0, %v1217_v49  ;;  %v1028_v50 = vmul.f32 %v1012_v18, %v2831_v58  ;;  %vm904_vm10 = vweird.f32 %v2562_v31  ;;  %v907_v32 = vand.u32 2147483647, %v2511_v57 }
 0x230   : > { %v1296_v53 = vmul.f32 %v1280_v7, %v3199_v0  ;;  %v1122_v63 = vmul.f32 %v1106_v3, %v2766_v33  ;;  %v1059_v42 = vmul.f32 %v1043_v30, %v2811_v38  ;;  %v2866_v46 = vsel %vm2848_vm8, %v895_v55, %v891_v54  ;;  %vm2870_vm11 = vmor %vm903_vm3, %vm904_vm10  ;;  %v3209_v7 = vld [vmem:[#allocation22_spill] sm:$0xff] }
 0x231   : > { %v1265_v27 = vsel %vm1233_vm4, %v1217_v49, %v1249_v12  ;;  %v1044_v35 = vadd.f32 1.4214138, %v1028_v50  ;;  %v997_v14 = vmul.f32 1.0614054, %v2866_v46  ;;  %v906_v33 = vsel %vm2870_vm11, %v2562_v31, %v902_v16 }
 0x232   : > { %1366 = vmatmul.f32.gmra.mxu2 %v1296_v53  ;;  %v1281_v4 = vadd.f32 1.0, %v1265_v27  ;;  %v1202_v29 = vmul.f32 %v3202_v61, %v1122_v63  ;;  %v1075_v8 = vadd.f32 -0.28449672, %v1059_v42  ;;  %vm2881_vm12 = vcmp.eq.f32.partialorder %v907_v32, 8.507059e+37 }
 0x233   : > { %v1060_v56 = vmul.f32 %v1044_v35, %v2831_v58  ;;  %v1013_v41 = vadd.f32 -1.4531521, %v997_v14  ;;  %v909_v24 = vand.u32 2147483648, %v2511_v57  ;;  %v917_v60 = vadd.f32 %v2565_v19, %v2617_v6 }
 0x234   : > { %v1297_v34 = vmul.f32 %v1281_v4, %v3205_v47  ;;  %v1218_v31 = vsub.f32 1.0, %v1202_v29  ;;  %v1091_v26 = vmul.f32 %v1075_v8, %v2811_v38  ;;  %vm919_vm13 = vweird.f32 %v2565_v19  ;;  %v3215_v8 = vld [vmem:[#allocation24_spill] sm:$0xff] }
 0x235   : > { %v1076_v36 = vadd.f32 -0.28449672, %v1060_v56  ;;  %v1029_v45 = vmul.f32 %v1013_v41, %v2866_v46  ;;  %v910_v23 = vor.u32 1.1754944e-38, %v909_v24  ;;  %vm2895_vm14 = vmor %vm918_vm7, %vm919_vm13  ;;  %v922_v57 = vand.u32 2147483647, %v2515_v51 }
 0x236   : > { %1407 = vmatmul.f32.gmra.mxu3 %v1297_v34  ;;  %v1250_v6 = vsub.f32 0.0, %v1218_v31  ;;  %v1107_v13 = vadd.f32 0.2548296, %v1091_v26  ;;  %v921_v20 = vsel %vm2895_vm14, %v2565_v19, %v917_v60  ;;  %v924_v43 = vand.u32 2147483648, %v2515_v51 }
 0x237   : > { %vm1235_vm15 = vcmp.ge.f32.partialorder %v3208_v62, 0.0  ;;  %v1092_v54 = vmul.f32 %v1076_v36, %v2831_v58  ;;  %v1045_v22 = vadd.f32 1.4214138, %v1029_v45  ;;  %v2908_v21 = vsel %vm2881_vm12, %v910_v23, %v906_v33  ;;  %v3226_v33 = vld [vmem:[#allocation33_spill] sm:$0xff] }
 0x238   : > { %vm923_vm0 = vcmp.eq.f32.partialorder %v922_v57, 8.507059e+37  ;;  %v1266_v10 = vsel %vm1234_vm9, %v1218_v31, %v1250_v6  ;;  %v1123_v5 = vmul.f32 %v1107_v13, %v2811_v38  ;;  %v998_v25 = vmul.f32 1.0614054, %v2908_v21  ;;  %v3210_v38 = vld [vmem:[#allocation25_spill] sm:$0xff]  ;;  %v3216_v31 = vld [vmem:[#allocation26_spill] sm:$0xff] }
 0x239   : > { %v925_v19 = vor.u32 1.1754944e-38, %v924_v43  ;;  %v1282_v49 = vadd.f32 1.0, %v1266_v10  ;;  %v1108_v51 = vadd.f32 0.2548296, %v1092_v54  ;;  %v1061_v18 = vmul.f32 %v1045_v22, %v2866_v46  ;;  %v3221_v10 = vld [vmem:[#allocation32_spill] sm:$0xff]  ;;  %v3229_v6 = vld [vmem:[#allocation30_spill] sm:$0xff] }
 0x23a   : > { %v932_v16 = vadd.f32 %v2638_v28, %v2673_v1  ;;  %vm1236_vm1 = vcmp.ge.f32.partialorder %v3209_v7, 0.0  ;;  %v1203_v3 = vmul.f32 %v2578_v17, %v1123_v5  ;;  %v1014_v30 = vadd.f32 -1.4531521, %v998_v25 }
 0x23b   : > { %v2919_v55 = vsel %vm923_vm0, %v925_v19, %v921_v20  ;;  %vm934_vm2 = vweird.f32 %v2638_v28  ;;  %v1298_v44 = vmul.f32 %v1282_v49, %v3210_v38  ;;  %v1124_v12 = vmul.f32 %v1108_v51, %v2831_v58  ;;  %v3219_v20 = vld [vmem:[#allocation37_spill] sm:$0xff]  ;;  %v3222_v51 = vld [vmem:[#allocation40_spill] sm:$0xff] }
 0x23c   : > { %v1077_v50 = vadd.f32 -0.28449672, %v1061_v18  ;;  %v999_v32 = vmul.f32 1.0614054, %v2919_v55  ;;  %vm933_vm3 = vweird.f32 %v2576_v40  ;;  %v1219_v0 = vsub.f32 1.0, %v1203_v3 }
 0x23d   : > { %v1030_v1 = vmul.f32 %v1014_v30, %v2908_v21  ;;  %v937_v53 = vand.u32 2147483647, %v2576_v40  ;;  %1369 = vmatmul.f32.gmra.mxu2 %v1298_v44  ;;  %v1204_v17 = vmul.f32 %v2590_v2, %v1124_v12  ;;  %vm2930_vm4 = vmor %vm933_vm3, %vm934_vm2  ;;  %v939_v58 = vand.u32 2147483648, %v2576_v40 }
 0x23e   : > { %v1093_v63 = vmul.f32 %v1077_v50, %v2866_v46  ;;  %v1015_v42 = vadd.f32 -1.4531521, %v999_v32  ;;  %v1251_v27 = vsub.f32 0.0, %v1219_v0  ;;  %v936_v14 = vsel %vm2930_vm4, %v2638_v28, %v932_v16 }
 0x23f   : > { %v1046_v35 = vadd.f32 1.4214138, %v1030_v1  ;;  %vm2938_vm5 = vcmp.eq.f32.partialorder %v937_v53, 8.507059e+37  ;;  %v1220_v2 = vsub.f32 1.0, %v1204_v17  ;;  %v947_v29 = vadd.f32 %v2661_v37, %v2694_v9  ;;  %v3224_v1 = vld [vmem:[#allocation16_spill] sm:$0xff] }
 0x240   : > { %v1109_v4 = vadd.f32 0.2548296, %v1093_v63  ;;  %v1031_v61 = vmul.f32 %v1015_v42, %v2919_v55  ;;  %vm1237_vm6 = vcmp.ge.f32.partialorder %v3215_v8, 0.0  ;;  %v1267_v40 = vsel %vm1235_vm15, %v1219_v0, %v1251_v27  ;;  %v3225_v42 = vld [vmem:[#allocation41_spill] sm:$0xff]  ;;  %v3227_v8 = vld [vmem:[#allocation27_spill] sm:$0xff] }
 0x241   : > { %v1062_v15 = vmul.f32 %v1046_v35, %v2908_v21  ;;  %v940_v56 = vor.u32 1.1754944e-38, %v939_v58  ;;  %vm949_vm7 = vweird.f32 %v2661_v37  ;;  %v1283_v28 = vadd.f32 1.0, %v1267_v40 }
 0x242   : > { %v1252_v41 = vsub.f32 0.0, %v1220_v2  ;;  %v1125_v24 = vmul.f32 %v1109_v4, %v2866_v46  ;;  %v1047_v60 = vadd.f32 1.4214138, %v1031_v61  ;;  %vm948_vm8 = vweird.f32 %v2599_v52 }
 0x243   : > { %v1078_v47 = vadd.f32 -0.28449672, %v1062_v15  ;;  %v2954_v9 = vsel %vm2938_vm5, %v940_v56, %v936_v14  ;;  %v952_v34 = vand.u32 2147483647, %v2599_v52  ;;  %v1299_v26 = vmul.f32 %v1283_v28, %v3216_v31  ;;  %vm2966_vm9 = vmor %vm948_vm8, %vm949_vm7 }
 0x244   : > { %v1268_v36 = vsel %vm1236_vm1, %v1220_v2, %v1252_v41  ;;  %v1205_v45 = vmul.f32 %v2605_v59, %v1125_v24  ;;  %v1063_v23 = vmul.f32 %v1047_v60, %v2919_v55  ;;  %v1000_v57 = vmul.f32 1.0614054, %v2954_v9 }
 0x245   : > { %v1284_v46 = vadd.f32 1.0, %v1268_v36  ;;  %v1094_v39 = vmul.f32 %v1078_v47, %v2908_v21  ;;  %v954_v13 = vand.u32 2147483648, %v2599_v52  ;;  %v3220_v43 = vsub.f32 0.0, %v3219_v20  ;;  %1410 = vmatmul.f32.gmra.mxu3 %v1299_v26 }
 0x246   : > { %v1221_v59 = vsub.f32 1.0, %v1205_v45  ;;  %v1079_v54 = vadd.f32 -0.28449672, %v1063_v23  ;;  %v951_v22 = vsel %vm2966_vm9, %v2661_v37, %v947_v29  ;;  %v1016_v19 = vadd.f32 -1.4531521, %v1000_v57  ;;  %v3223_v37 = vld [vmem:[#allocation15_spill] sm:$0xff] }
 0x247   : > { %v1160_v62 = vmul.f32 %v3220_v43, %v3219_v20  ;;  %v1300_v5 = vmul.f32 %v1284_v46, %v3221_v10  ;;  %v1110_v25 = vadd.f32 0.2548296, %v1094_v39  ;;  %v955_v49 = vor.u32 1.1754944e-38, %v954_v13 }
 0x248   : > { %v1145_v18 = vsub.f32 0.0, %v3222_v51  ;;  %v1253_v16 = vsub.f32 0.0, %v1221_v59  ;;  %v1095_v52 = vmul.f32 %v1079_v54, %v2919_v55  ;;  %vm953_vm10 = vcmp.eq.f32.partialorder %v952_v34, 8.507059e+37  ;;  %v624_v7 = vpop.f32.mrf.mxu0  ;;  %v665_v3 = vpop.f32.mrf.mxu1  ;;  %v3230_v54 = vld [vmem:[#allocation28_spill] sm:$0xff] }
 0x249   : > { %1372 = vmatmul.f32.gmra.mxu2 %v1300_v5  ;;  %v1126_v30 = vmul.f32 %v1110_v25, %v2908_v21  ;;  %v1032_v38 = vmul.f32 %v1016_v19, %v2954_v9  ;;  %v956_v44 = vsel %vm953_vm10, %v955_v49, %v951_v22  ;;  %v2983_v12 = vadd.f32 %v624_v7, %v3223_v37 }
 0x24a   : > { %v1269_v50 = vsel %vm1237_vm6, %v1221_v59, %v1253_v16  ;;  %v1111_v32 = vadd.f32 0.2548296, %v1095_v52  ;;  %v1001_v0 = vmul.f32 1.0614054, %v956_v44  ;;  %v2988_v53 = vadd.f32 %v665_v3, %v3224_v1 }
 0x24b   : > { %v1188_v17 = vmul.f32 1.442695, %v1160_v62  ;;  %v1285_v63 = vadd.f32 1.0, %v1269_v50  ;;  %v1206_v11 = vmul.f32 %v3225_v42, %v1126_v30  ;;  %v1048_v58 = vadd.f32 1.4214138, %v1032_v38  ;;  %v3231_v50 = vld [vmem:[#allocation35_spill] sm:$0xff] }
 0x24c   : > { %v1161_v21 = vmul.f32 %v1145_v18, %v3222_v51  ;;  %v1127_v27 = vmul.f32 %v1111_v32, %v2919_v55  ;;  %v1017_v35 = vadd.f32 -1.4531521, %v1001_v0  ;;  %v2994_v14 = vmul.f32 0.70710677, %v2983_v12  ;;  %v3228_v55 = vld [vmem:[#allocation29_spill] sm:$0xff] }
 0x24d   : > { %v1301_v2 = vmul.f32 %v1285_v63, %v3226_v33  ;;  %v1222_v4 = vsub.f32 1.0, %v1206_v11  ;;  %v1064_v61 = vmul.f32 %v1048_v58, %v2954_v9  ;;  %v2999_v29 = vmul.f32 0.70710677, %v2988_v53  ;;  %v3232_v63 = vld [vmem:[#allocation34_spill] sm:$0xff]  ;;  %v3233_v11 = vld [vmem:[#allocation36_spill] sm:$0xff] }
 0x24e   : > { %v678_v40 = vmul.f32 0.5, %v3227_v8  ;;  %v1207_v15 = vmul.f32 %v2654_v48, %v1127_v27  ;;  %v1033_v56 = vmul.f32 %v1017_v35, %v956_v44  ;;  %v3004_v28 = vand.u32 2147483647, %v2994_v14 }
 0x24f   : > { %vm1238_vm11 = vcmp.ge.f32.partialorder %v3228_v55, 0.0  ;;  %1413 = vmatmul.f32.gmra.mxu3 %v1301_v2  ;;  %v1254_v41 = vsub.f32 0.0, %v1222_v4  ;;  %v1080_v24 = vadd.f32 -0.28449672, %v1064_v61  ;;  %v3008_v60 = vand.u32 2147483647, %v2999_v29 }
 0x250   : > { %1731 = vpow2.f32 %v1188_v17  ;;  %v1223_v47 = vsub.f32 1.0, %v1207_v15  ;;  %v1049_v34 = vadd.f32 1.4214138, %v1033_v56  ;;  %v730_v31 = vmul.f32 0.3275911, %v3004_v28  ;;  %v3234_v2 = vld [vmem:[#allocation39_spill] sm:$0xff] }
 0x251   : > { %v1190_v26 = vmul.f32 1.442695, %v1161_v21  ;;  %v1270_v36 = vsel %vm1238_vm11, %v1222_v4, %v1254_v41  ;;  %v1096_v48 = vmul.f32 %v1080_v24, %v2954_v9  ;;  %v731_v45 = vmul.f32 0.3275911, %v3008_v60 }
 0x252   : > { %v1286_v23 = vadd.f32 1.0, %v1270_v36  ;;  %v1255_v46 = vsub.f32 0.0, %v1223_v47  ;;  %v1065_v39 = vmul.f32 %v1049_v34, %v956_v44  ;;  %v746_v57 = vadd.f32 1.0, %v730_v31 }
 0x253   : > { %vm1239_vm12 = vcmp.ge.f32.partialorder %v3229_v6, 0.0  ;;  %v1112_v13 = vadd.f32 0.2548296, %v1096_v48  ;;  %v3014_v20 = vadd.f32 1.0, %v731_v45  ;;  %v679_v22 = vmul.f32 0.5, %v3230_v54 }
 0x254   : > { %v1302_v43 = vmul.f32 %v1286_v23, %v678_v40  ;;  %v1271_v62 = vsel %vm1239_vm12, %v1223_v47, %v1255_v46  ;;  %v1081_v59 = vadd.f32 -0.28449672, %v1065_v39  ;;  %1733 = vrcp.f32 %v746_v57 }
 0x255   : > { %1735 = vpow2.f32 %v1190_v26  ;;  %v1287_v10 = vadd.f32 1.0, %v1271_v62  ;;  %v1128_v5 = vmul.f32 %v1112_v13, %v2954_v9  ;;  %vm1240_vm13 = vcmp.ge.f32.partialorder %v3231_v50, 0.0 }
 0x256   : > { %v1732_v25 = vpop.eup %1731  ;;  %1375 = vmatmul.f32.gmra.mxu2 %v1302_v43  ;;  %v1097_v19 = vmul.f32 %v1081_v59, %v956_v44  ;;  %1737 = vrcp.f32 %v3014_v20  ;;  %v969_v17 = vand.u32 2147483648, %v746_v57  ;;  %v680_v42 = vmul.f32 0.5, %v3232_v63 }
 0x257   : > { %v1303_v49 = vmul.f32 %v1287_v10, %v679_v22  ;;  %v1208_v51 = vmul.f32 %v1732_v25, %v1128_v5  ;;  %v681_v58 = vmul.f32 0.5, %v3233_v11  ;;  %v967_v33 = vand.u32 2147483647, %v746_v57 }
 0x258   : > { %v1113_v18 = vadd.f32 0.2548296, %v1097_v19  ;;  %vm1241_vm15 = vcmp.ge.f32.partialorder %v3234_v2, 0.0  ;;  %vm963_vm0 = vweird.f32 %v746_v57  ;;  %vm978_vm1 = vweird.f32 %v3014_v20 }
 0x259   : > { %1416 = vmatmul.f32.gmra.mxu3 %v1303_v49  ;;  %v1224_v16 = vsub.f32 1.0, %v1208_v51  ;;  %v970_v15 = vor.u32 1.1754944e-38, %v969_v17  ;;  %v982_v55 = vand.u32 2147483647, %v3014_v20  ;;  %v984_v41 = vand.u32 2147483648, %v3014_v20 }
 0x25a   : > { %v1734_v52 = vpop.eup %1733  ;;  %v1129_v7 = vmul.f32 %v1113_v18, %v956_v44  ;;  %vm968_vm4 = vcmp.eq.f32.partialorder %v967_v33, 8.507059e+37  ;;  %v1146_v31 = vsub.f32 0.0, %v3004_v28  ;;  %v1147_v46 = vsub.f32 0.0, %v3008_v60 }
 0x25b   : > { %v1736_v3 = vpop.eup %1735  ;;  %v1256_v30 = vsub.f32 0.0, %v1224_v16  ;;  %v959_v38 = vmul.f32 %v1734_v52, %v746_v57  ;;  %vm964_vm14 = vweird.f32 %v1734_v52  ;;  %v985_v36 = vor.u32 1.1754944e-38, %v984_v41 }
 0x25c   : > { %v1738_v37 = vpop.eup %1737  ;;  %v1209_v32 = vmul.f32 %v1736_v3, %v1129_v7  ;;  %vm965_vm2 = vmor %vm963_vm0, %vm964_vm14  ;;  %vm983_vm6 = vcmp.eq.f32.partialorder %v982_v55, 8.507059e+37  ;;  %v1162_v13 = vmul.f32 %v1146_v31, %v3004_v28  ;;  %v1163_v59 = vmul.f32 %v1147_v46, %v3008_v60 }
 0x25d   : > { %v1272_v9 = vsel %vm1240_vm13, %v1224_v16, %v1256_v30  ;;  %v960_v0 = vsub.f32 1.0, %v959_v38  ;;  %v974_v1 = vmul.f32 %v1738_v37, %v3014_v20  ;;  %vm979_vm3 = vweird.f32 %v1738_v37 }
 0x25e   : > { %v1288_v21 = vadd.f32 1.0, %v1272_v9  ;;  %v1225_v27 = vsub.f32 1.0, %v1209_v32  ;;  %vm980_vm5 = vmor %vm978_vm1, %vm979_vm3  ;;  %v1192_v22 = vmul.f32 1.442695, %v1162_v13  ;;  %v1194_v25 = vmul.f32 1.442695, %v1163_v59 }
 0x25f   : > { %v961_v35 = vmul.f32 %v1734_v52, %v960_v0  ;;  %v975_v44 = vsub.f32 1.0, %v974_v1  ;;  %vm1242_vm7 = vcmp.ge.f32.partialorder %v2994_v14, 0.0  ;;  %v682_v17 = vmul.f32 0.5, %v2983_v12  ;;  %v1660_v14 = vld [vmem:[%s3092_s6] ss:$0 sm:$0xff] }
 0x260   : > { %v1304_v4 = vmul.f32 %v1288_v21, %v680_v42  ;;  %v1257_v61 = vsub.f32 0.0, %v1225_v27  ;;  %1739 = vpow2.f32 %v1192_v22  ;;  %vm1243_vm8 = vcmp.ge.f32.partialorder %v2999_v29, 0.0 }
 0x261   : > { %v976_v8 = vmul.f32 %v1738_v37, %v975_v44  ;;  %v962_v40 = vadd.f32 %v1734_v52, %v961_v35  ;;  %1741 = vpow2.f32 %v1194_v25  ;;  %v683_v11 = vmul.f32 0.5, %v2988_v53 }
 0x262   : > { %1378 = vmatmul.f32.gmra.mxu2 %v1304_v4  ;;  %v1273_v56 = vsel %vm1241_vm15, %v1225_v27, %v1257_v61 }
 0x263   : > { %v1289_v24 = vadd.f32 1.0, %v1273_v56  ;;  %v966_v47 = vsel %vm965_vm2, %v1734_v52, %v962_v40  ;;  %v977_v34 = vadd.f32 %v1738_v37, %v976_v8 }
 0x264   : > { %v971_v26 = vsel %vm968_vm4, %v970_v15, %v966_v47 }
 0x265   : > { %v1305_v48 = vmul.f32 %v1289_v24, %v681_v58  ;;  %v1002_v45 = vmul.f32 1.0614054, %v971_v26  ;;  %v981_v23 = vsel %vm980_vm5, %v1738_v37, %v977_v34 }
 0x266   : > { %v986_v39 = vsel %vm983_vm6, %v985_v36, %v981_v23  ;;  %v1740_v3 = vpop.eup %1739 }
 0x267   : > { %1419 = vmatmul.f32.gmra.mxu3 %v1305_v48  ;;  %v1018_v57 = vadd.f32 -1.4531521, %v1002_v45  ;;  %v1003_v6 = vmul.f32 1.0614054, %v986_v39  ;;  %v1742_v60 = vpop.eup %1741 }
 0x269   : > { %v1034_v43 = vmul.f32 %v1018_v57, %v971_v26  ;;  %v1019_v62 = vadd.f32 -1.4531521, %v1003_v6 }
 0x26b   : > { %v1050_v54 = vadd.f32 1.4214138, %v1034_v43  ;;  %v1035_v20 = vmul.f32 %v1019_v62, %v986_v39 }
 0x26d   : > { %v1066_v10 = vmul.f32 %v1050_v54, %v971_v26  ;;  %v1051_v5 = vadd.f32 1.4214138, %v1035_v20 }
 0x26f   : > { %v1082_v19 = vadd.f32 -0.28449672, %v1066_v10  ;;  %v1067_v49 = vmul.f32 %v1051_v5, %v986_v39 }
 0x271   : > { %v1098_v51 = vmul.f32 %v1082_v19, %v971_v26  ;;  %v1083_v18 = vadd.f32 -0.28449672, %v1067_v49 }
 0x273   : > { %v1114_v16 = vadd.f32 0.2548296, %v1098_v51  ;;  %v1099_v52 = vmul.f32 %v1083_v18, %v986_v39 }
 0x275   : > { %v1130_v7 = vmul.f32 %v1114_v16, %v971_v26  ;;  %v1115_v28 = vadd.f32 0.2548296, %v1099_v52 }
 0x277   : > { %v1210_v30 = vmul.f32 %v1740_v3, %v1130_v7  ;;  %v1131_v38 = vmul.f32 %v1115_v28, %v986_v39 }
 0x279   : > { %v1226_v37 = vsub.f32 1.0, %v1210_v30  ;;  %v1211_v50 = vmul.f32 %v1742_v60, %v1131_v38 }
 0x27b   : > { %v1258_v32 = vsub.f32 0.0, %v1226_v37  ;;  %v1227_v9 = vsub.f32 1.0, %v1211_v50 }
 0x27d   : > { %v1274_v0 = vsel %vm1242_vm7, %v1226_v37, %v1258_v32  ;;  %v1259_v1 = vsub.f32 0.0, %v1227_v9 }
 0x27e   : > { %v1290_v63 = vadd.f32 1.0, %v1274_v0 }
 0x27f   : > { %v1275_v42 = vsel %vm1243_vm8, %v1227_v9, %v1259_v1 }
 0x280   : > { %v1306_v58 = vmul.f32 %v1290_v63, %v682_v17  ;;  %v1291_v21 = vadd.f32 1.0, %v1275_v42 }
 0x282   : > { %1381 = vmatmul.f32.gmra.mxu2 %v1306_v58  ;;  %v1307_v27 = vmul.f32 %v1291_v21, %v683_v11 }
 0x284   : > { %1422 = vmatmul.f32.gmra.mxu3 %v1307_v27 }
 0x29b   : > { %v1361_v35 = vpop.f32.mrf.mxu2 }
 0x29c   : > { %v1362_v44 = vadd.f32 %v1660_v14, %v1361_v35 }
 0x2a4   : > { %v1402_v33 = vpop.f32.mrf.mxu3 }
 0x2a5   : > { %v1403_v2 = vadd.f32 %v1402_v33, %v1362_v44 }
 0x2a7   : > { %1426 = vst [vmem:[%s3042_s22] sm:$0xff] %v1403_v2 }
 0x2ab   : > { %v1364_v12 = vpop.f32.mrf.mxu2 }
 0x2ac   : > { %v1365_v53 = vadd.f32 %v1660_v14, %v1364_v12 }
 0x2ad   : > { %v1405_v29 = vpop.f32.mrf.mxu3 }
 0x2ae   : > { %v1406_v4 = vadd.f32 %v1405_v29, %v1365_v53 }
 0x2b0   : > { %1427 = vst [vmem:[%s3042_s22 + $0x8] sm:$0xff] %v1406_v4 }
 0x2b5   : > { %v1367_v61 = vpop.f32.mrf.mxu2 }
 0x2b6   : > { %v1368_v8 = vadd.f32 %v1660_v14, %v1367_v61 }
 0x2b9   : > { %v1408_v40 = vpop.f32.mrf.mxu3 }
 0x2ba   : > { %v1409_v15 = vadd.f32 %v1408_v40, %v1368_v8 }
 0x2bc   : > { %1428 = vst [vmem:[%s3042_s22 + $0x10] sm:$0xff] %v1409_v15 }
 0x2c0   : > { %v1370_v56 = vpop.f32.mrf.mxu2 }
 0x2c1   : > { %v1371_v55 = vadd.f32 %v1660_v14, %v1370_v56 }
 0x2c8   : > { %v1411_v41 = vpop.f32.mrf.mxu3 }
 0x2c9   : > { %v1412_v24 = vadd.f32 %v1411_v41, %v1371_v55 }
 0x2cb   : > { %1429 = vst [vmem:[%s3042_s22 + $0x18] sm:$0xff] %v1412_v24 }
 0x2cc   : > { %v1373_v47 = vpop.f32.mrf.mxu2 }
 0x2cd   : > { %v1374_v34 = vadd.f32 %v1660_v14, %v1373_v47 }
 0x2d2   : > { %v1414_v31 = vpop.f32.mrf.mxu3 }
 0x2d3   : > { %v1415_v26 = vadd.f32 %v1414_v31, %v1374_v34 }
 0x2d5   : > { %1430 = vst [vmem:[%s3042_s22 + $0x20] sm:$0xff] %v1415_v26 }
 0x2d9   : > { %v1376_v36 = vpop.f32.mrf.mxu2 }
 0x2da   : > { %v1377_v48 = vadd.f32 %v1660_v14, %v1376_v36 }
 0x2dc   : > { %v1417_v45 = vpop.f32.mrf.mxu3 }
 0x2dd   : > { %v1418_v23 = vadd.f32 %v1417_v45, %v1377_v48 }
 0x2df   : > { %1431 = vst [vmem:[%s3042_s22 + $0x28] sm:$0xff] %v1418_v23 }
 0x2e5   : > { %v1379_v46 = vpop.f32.mrf.mxu2 }
 0x2e6   : > { %v1380_v39 = vadd.f32 %v1660_v14, %v1379_v46 }
 0x2ea   : > { %v1420_v57 = vpop.f32.mrf.mxu3 }
 0x2eb   : > { %v1421_v6 = vadd.f32 %v1420_v57, %v1380_v39 }
 0x2ed   : > { %1432 = vst [vmem:[%s3042_s22 + $0x30] sm:$0xff] %v1421_v6 }
 0x305   : > { %v1382_v13 = vpop.f32.mrf.mxu2 }
 0x306   : > { %v1383_v43 = vadd.f32 %v1660_v14, %v1382_v13 }
 0x307   : > { %v1423_v62 = vpop.f32.mrf.mxu3 }
 0x308   : > { %v1424_v59 = vadd.f32 %v1423_v62, %v1383_v43 }
 0x30a   : > { %1433 = vst [vmem:[%s3042_s22 + $0x38] sm:$0xff] %v1424_v59 }
 0x30b   : > { %1890 = shalt.err (!%p1887_p11)
}
 0x30c   : > { %s1947_s21 = smov 128   ;;  %s1948_s22 = smov 8  }
 0x30d   : > { %1588 = dma.vmem_to_hbm [thread:$0]  (%p2074_p3), %s1448_s1, 1024, %s1450_s14, %s1435_s23, %s1947_s21, %s1947_s21, %s1948_s22  }
 0x30e PF: > { %s1464_s29 = sand.u32 1, %s1925_s24   ;;  %p3235_p12 = scmp.ge.s32.totalorder %s1937_s27, 2 }
 0x30f   : > { %s1465_s9 = scalar_lea.sflag [#allocation4], %s1464_s29 }
 0x310   : > { %p1605_p13 = pnand %p3235_p12, %p2024_p6 }
 0x312   : > { %p1606_p0 = pneg %p1605_p13 }
 0x314   : > { %1920 = dma.done.wait (%p1606_p0), %s1465_s9, 1024  }
 0x315   : > { %1922 = vsyncadd (%p1606_p0), %s1465_s9, 4294966272  ;;  %p22_p5 = scmp.ge.s32.totalorder %s2061_s15, 4   ;;  %s3236_s24 = smov %s1929_s25 }
 0x316   : > { %s3237_s25 = smov %s1933_s26  ;;  %s3238_s26 = smov %s2070_s19 }
 0x317   : > { %s3239_s27 = smov %s2061_s15  ;;  %24 = sbr.rel (!%p22_p5) target bundleno = 9 (0x9), region = 105 }
 0x31c   :  { %1471 = vsyncpa [#allocation3], 1 }
 0x31d   :  { %1473 = vsyncpa [#allocation3 + $0x1], 1 }
 0x31e   :  { %1474 = vsyncpa [#allocation6], 1 }
 0x31f   :  { %1475 = vsyncpa [#allocation9], 1 }
 0x320   :  { %1476 = vsyncpa [#allocation4], 1 }
 0x321   :  { %1478 = vsyncpa [#allocation4 + $0x1], 1 }

</bundles_post_ra>
